<compile_context>
chip_gen: v5e
topology: v5e:2x2
jax: 0.10.0
libtpu: 0.0.40
codegen_flags: <defaults>
</compile_context>

<pallas_src>
import functools

import jax
import jax.numpy as jnp
from jax.experimental import pallas as pl
from jax.experimental.pallas import tpu as pltpu


_LAYER_ORDER = ("encoder_1", "encoder_2", "encoder_3",
                "decoder_1", "decoder_2", "decoder_3")
_BN_EPS = 1e-5


# ----------------------------------------------------------------------------
# Fused kernel: BatchNorm1d + 6 EdgeConv layers, everything resident in VMEM.
#   x_ref    : (N, Dmax)     node features, feature-padded with zeros
#   g_ref    : (E, 2N)       bf16 concat of one-hot target / source gathers
#   mean_ref : (N, E)        f32 exact mean operator (one_hot(tgt).T / in_degree)
#   bn_ref   : (2, Dmax)     f32 BatchNorm gamma / beta (padded)
#   w1_ref   : (6, Dmax, 2H) bf16   [W1a - W1b | W1b] per layer, row-padded
#   w2_ref   : (6, H, H)     bf16
#   w3_ref   : (6, H, Dmax)  bf16   output-column padded with zeros
#   b_ref    : (6, 3, Dmax)  f32    rows = (b1, b2, b3-padded)
#   o_ref    : (N, Dmax)     f32 output (wrapper slices to input_dim)
# ----------------------------------------------------------------------------
def _fused_edgenet_kernel(x_ref, g_ref, mean_ref, bn_ref,
                          w1_ref, w2_ref, w3_ref, b_ref, o_ref,
                          *, hid, num_layers):
    x = x_ref[...]                                        # (N, Dmax) f32, padded cols 0

    # --- BatchNorm1d (training-mode batch stats, affine) --------------------------
    bn = bn_ref[...]
    mu = jnp.mean(x, axis=0, keepdims=True)
    var = jnp.mean((x - mu) * (x - mu), axis=0, keepdims=True)     # biased variance
    x = (x - mu) * jax.lax.rsqrt(var + _BN_EPS) * bn[0:1, :] + bn[1:2, :]

    g = g_ref[...]                                        # (E, 2N) bf16, exact 0/1
    mean_mat = mean_ref[...]                              # (N, E)  f32, exact 1/deg

    for layer in range(num_layers):                       # static unroll (toy sizes)
        w1 = w1_ref[layer]                                # (Dmax, 2H) bf16
        w2 = w2_ref[layer]                                # (H, H)     bf16
        w3 = w3_ref[layer]                                # (H, Dmax)  bf16
        bl = b_ref[layer]                                 # (3, Dmax)  f32
        b1, b2, b3 = bl[0:1, :], bl[1:2, :], bl[2:3, :]

        # Node-space projection (one MXU op): p = x @ [W1a-W1b | W1b]  -> (N, 2H)
        p = jnp.dot(x.astype(jnp.bfloat16), w1, preferred_element_type=jnp.float32)
        # Stack to (2N, H) so both gathers fuse into ONE edge-space matmul:
        #   h1 = [G_tgt | G_src] @ [x@(W1a-W1b) ; x@W1b] + b1
        pcat = jnp.concatenate([p[:, :hid], p[:, hid:]], axis=0).astype(jnp.bfloat16)
        h = jnp.dot(g, pcat, preferred_element_type=jnp.float32) + b1      # (E, H)
        h = jnp.maximum(h, 0.0)

        h = jnp.dot(h.astype(jnp.bfloat16), w2, preferred_element_type=jnp.float32) + b2
        h = jnp.maximum(h, 0.0)

        h = jnp.dot(h.astype(jnp.bfloat16), w3, preferred_element_type=jnp.float32) + b3
        if layer < num_layers - 1:            # last edge-MLP (decoder_3) has no trailing ReLU
            h = jnp.maximum(h, 0.0)

        # Mean aggregation over incoming edges: one exact f32 MXU matmul.
        x = jnp.dot(mean_mat, h, preferred_element_type=jnp.float32)       # (N, Dmax)

    o_ref[...] = x   # tiny (N, Dmax) final store; not worth extra lane padding


# ----------------------------------------------------------------------------
# Wrapper: pack parameters into 4 slabs, build gather / mean operators once,
# run ONE pallas_call, slice the padded feature dim back off.
# ----------------------------------------------------------------------------
def _pack_params(params, dmax):
    w1s, w2s, w3s, bs = [], [], [], []
    for name in _LAYER_ORDER:
        w1a, w1b, b1, w2, b2, w3, b3 = params[name]
        din, hid = w1a.shape
        dout = w3.shape[1]
        assert hid == dmax and din <= dmax and dout <= dmax
        # W1cat = [W1a - W1b | W1b], rows zero-padded to Dmax (padded x cols are 0).
        w1cat = jnp.concatenate([w1a - w1b, w1b], axis=1)               # (din, 2H)
        w1cat = jnp.pad(w1cat, ((0, dmax - din), (0, 0)))
        # W3 / b3 column-padded with zeros so padded node-feature columns stay exactly 0.
        w3p = jnp.pad(w3, ((0, 0), (0, dmax - dout)))
        b3p = jnp.pad(b3, ((0, 0), (0, dmax - dout)))
        w1s.append(w1cat)
        w2s.append(w2)
        w3s.append(w3p)
        bs.append(jnp.concatenate([b1, b2, b3p], axis=0))               # (3, Dmax)
    return (jnp.stack(w1s).astype(jnp.bfloat16),    # (6, Dmax, 2H)
            jnp.stack(w2s).astype(jnp.bfloat16),    # (6, H, H)
            jnp.stack(w3s).astype(jnp.bfloat16),    # (6, H, Dmax)
            jnp.stack(bs).astype(jnp.float32))      # (6, 3, Dmax)


def edgenet_deeper3_forward(x, edge_index, params, bn_gamma=None, bn_beta=None):
    n, input_dim = x.shape
    hid = params["encoder_1"][3].shape[0]           # big_dim (W2 is (H, H))
    dmax = hid                                      # padded node-feature width

    src = edge_index[0]   # j (source)
    tgt = edge_index[1]   # i (target)

    gt = jax.nn.one_hot(tgt, n, dtype=jnp.float32)                       # (E, N)
    gs = jax.nn.one_hot(src, n, dtype=jnp.float32)                       # (E, N)
    g = jnp.concatenate([gt, gs], axis=1).astype(jnp.bfloat16)           # (E, 2N), exact in bf16
    deg = jnp.maximum(jnp.sum(gt, axis=0), 1.0)                          # clamped in-degree
    mean_mat = (gt / deg[None, :]).T                                     # (N, E), exact f32 divide

    if bn_gamma is None:
        bn_gamma = jnp.ones((input_dim,), jnp.float32)
    if bn_beta is None:
        bn_beta = jnp.zeros((input_dim,), jnp.float32)
    bn = jnp.stack([jnp.pad(bn_gamma.astype(jnp.float32), (0, dmax - input_dim)),
                    jnp.pad(bn_beta.astype(jnp.float32), (0, dmax - input_dim))])  # (2, Dmax)

    x_pad = jnp.pad(x.astype(jnp.float32), ((0, 0), (0, dmax - input_dim)))        # (N, Dmax)

    w1_slab, w2_slab, w3_slab, b_slab = _pack_params(params, dmax)

    kernel = functools.partial(_fused_edgenet_kernel,
                               hid=hid, num_layers=len(_LAYER_ORDER))
    vmem = pl.BlockSpec(memory_space=pltpu.MemorySpace.VMEM)
    out = pl.pallas_call(
        kernel,
        out_shape=jax.ShapeDtypeStruct((n, dmax), jnp.float32),
        in_specs=[vmem] * 8,
        out_specs=vmem,
    )(x_pad, g, mean_mat, bn, w1_slab, w2_slab, w3_slab, b_slab)

    return out[:, :input_dim]


# ----------------------------------------------------------------------------
# Parameter construction (deterministic, mimics nn.Linear default init bounds).
# Weights stored as (in_features, out_features) == transpose of torch layout.
# ----------------------------------------------------------------------------
def _linear_params(key, fan_in, fan_out):
    kw, kb = jax.random.split(key)
    bound = 1.0 / jnp.sqrt(jnp.float32(fan_in))
    w = jax.random.uniform(kw, (fan_in, fan_out), jnp.float32, -bound, bound)
    b = jax.random.uniform(kb, (1, fan_out), jnp.float32, -bound, bound)
    return w, b


def _edgeconv_params(key, din, hid, dout):
    """Three Linear layers: (2*din -> hid), (hid -> hid), (hid -> dout)."""
    k1, k2, k3 = jax.random.split(key, 3)
    w1, b1 = _linear_params(k1, 2 * din, hid)
    w2, b2 = _linear_params(k2, hid, hid)
    w3, b3 = _linear_params(k3, hid, dout)
    w1a, w1b = w1[:din, :], w1[din:, :]   # split Linear(2*din, hid) for the concat-free form
    return (w1a, w1b, b1, w2, b2, w3, b3)


def init_edgenet_params(key, input_dim=4, big_dim=32, hidden_dim=2):
    keys = jax.random.split(key, 6)
    return {
        "encoder_1": _edgeconv_params(keys[0], input_dim, big_dim, big_dim),
        "encoder_2": _edgeconv_params(keys[1], big_dim, big_dim, big_dim),
        "encoder_3": _edgeconv_params(keys[2], big_dim, big_dim, hidden_dim),
        "decoder_1": _edgeconv_params(keys[3], hidden_dim, big_dim, big_dim),
        "decoder_2": _edgeconv_params(keys[4], big_dim, big_dim, big_dim),
        "decoder_3": _edgeconv_params(keys[5], big_dim, big_dim, input_dim),
    }


# ----------------------------------------------------------------------------
# Demo / smoke test
# ----------------------------------------------------------------------------
if __name__ == "__main__":
    key = jax.random.PRNGKey(0)
    k_x, k_p = jax.random.split(key)

    N = 16            # nodes
    INPUT_DIM = 4
    BIG_DIM = 32
    HIDDEN_DIM = 2

    # Deterministic small graph: ring edges both directions + skip-by-2 edges.  E = 48.
    i = jnp.arange(N, dtype=jnp.int32)
    src = jnp.concatenate([i, (i + 1) % N, i])
    tgt = jnp.concatenate([(i + 1) % N, i, (i + 2) % N])
    edge_index = jnp.stack([src, tgt], axis=0)          # (2, E): row0 = source j, row1 = target i

    x = jax.random.normal(k_x, (N, INPUT_DIM), dtype=jnp.float32)
    params = init_edgenet_params(k_p, INPUT_DIM, BIG_DIM, HIDDEN_DIM)

    fwd = jax.jit(edgenet_deeper3_forward)
    out = fwd(x, edge_index, params)
    out = jax.block_until_ready(out)

    assert out.shape == (N, INPUT_DIM), out.shape
    assert jnp.all(jnp.isfinite(out))
    print("KERNEL_OK")
</pallas_src>

<mosaic_0001>
module attributes {stable_mosaic.version = 11 : i64} {
  func.func @_fused_edgenet_kernel(%arg0: memref<16x32xf32, #tpu.memory_space<vmem>>, %arg1: memref<48x32xbf16, #tpu.memory_space<vmem>>, %arg2: memref<16x48xf32, #tpu.memory_space<vmem>>, %arg3: memref<2x32xf32, #tpu.memory_space<vmem>>, %arg4: memref<6x32x64xbf16, #tpu.memory_space<vmem>>, %arg5: memref<6x32x32xbf16, #tpu.memory_space<vmem>>, %arg6: memref<6x32x32xbf16, #tpu.memory_space<vmem>>, %arg7: memref<6x3x32xf32, #tpu.memory_space<vmem>>, %arg8: memref<16x32xf32, #tpu.memory_space<vmem>>) attributes {dimension_semantics = [], scalar_prefetch = 0 : i64, scratch_operands = 0 : i64, tpu.core_type = #tpu.core_type<tc>} {
    %c0 = arith.constant 0 : index
    %c0_0 = arith.constant 0 : index
    %0 = vector.load %arg0[%c0, %c0_0] : memref<16x32xf32, #tpu.memory_space<vmem>>, vector<16x32xf32>
    %c0_1 = arith.constant 0 : index
    %c0_2 = arith.constant 0 : index
    %1 = vector.load %arg3[%c0_1, %c0_2] : memref<2x32xf32, #tpu.memory_space<vmem>>, vector<2x32xf32>
    %cst = arith.constant dense<0.000000e+00> : vector<32xf32>
    %2 = vector.multi_reduction <add>, %0, %cst [0] : vector<16x32xf32> to vector<32xf32>
    %3 = vector.shape_cast %2 : vector<32xf32> to vector<1x32xf32>
    %cst_3 = arith.constant 1.600000e+01 : f32
    %4 = vector.broadcast %cst_3 : f32 to vector<1x32xf32>
    %5 = arith.divf %3, %4 : vector<1x32xf32>
    %6 = vector.broadcast %5 : vector<1x32xf32> to vector<16x32xf32>
    %7 = arith.subf %0, %6 : vector<16x32xf32>
    %8 = vector.broadcast %5 : vector<1x32xf32> to vector<16x32xf32>
    %9 = arith.subf %0, %8 : vector<16x32xf32>
    %10 = arith.mulf %7, %9 : vector<16x32xf32>
    %cst_4 = arith.constant dense<0.000000e+00> : vector<32xf32>
    %11 = vector.multi_reduction <add>, %10, %cst_4 [0] : vector<16x32xf32> to vector<32xf32>
    %12 = vector.shape_cast %11 : vector<32xf32> to vector<1x32xf32>
    %cst_5 = arith.constant 1.600000e+01 : f32
    %13 = vector.broadcast %cst_5 : f32 to vector<1x32xf32>
    %14 = arith.divf %12, %13 : vector<1x32xf32>
    %15 = vector.broadcast %5 : vector<1x32xf32> to vector<16x32xf32>
    %16 = arith.subf %0, %15 : vector<16x32xf32>
    %cst_6 = arith.constant 9.99999974E-6 : f32
    %17 = vector.broadcast %cst_6 : f32 to vector<1x32xf32>
    %18 = arith.addf %14, %17 : vector<1x32xf32>
    %19 = math.rsqrt %18 : vector<1x32xf32>
    %20 = vector.broadcast %19 : vector<1x32xf32> to vector<16x32xf32>
    %21 = arith.mulf %16, %20 : vector<16x32xf32>
    %22 = vector.extract_strided_slice %1 {offsets = [0, 0], sizes = [1, 32], strides = [1, 1]} : vector<2x32xf32> to vector<1x32xf32>
    %23 = vector.broadcast %22 : vector<1x32xf32> to vector<16x32xf32>
    %24 = arith.mulf %21, %23 : vector<16x32xf32>
    %25 = vector.extract_strided_slice %1 {offsets = [1, 0], sizes = [1, 32], strides = [1, 1]} : vector<2x32xf32> to vector<1x32xf32>
    %26 = vector.broadcast %25 : vector<1x32xf32> to vector<16x32xf32>
    %27 = arith.addf %24, %26 : vector<16x32xf32>
    %c0_7 = arith.constant 0 : index
    %c0_8 = arith.constant 0 : index
    %28 = vector.load %arg1[%c0_7, %c0_8] : memref<48x32xbf16, #tpu.memory_space<vmem>>, vector<48x32xbf16>
    %c0_9 = arith.constant 0 : index
    %c0_10 = arith.constant 0 : index
    %29 = vector.load %arg2[%c0_9, %c0_10] : memref<16x48xf32, #tpu.memory_space<vmem>>, vector<16x48xf32>
    %c0_11 = arith.constant 0 : index
    %c0_12 = arith.constant 0 : index
    %c0_13 = arith.constant 0 : index
    %30 = vector.load %arg4[%c0_11, %c0_12, %c0_13] : memref<6x32x64xbf16, #tpu.memory_space<vmem>>, vector<1x32x64xbf16>
    %31 = vector.shape_cast %30 : vector<1x32x64xbf16> to vector<32x64xbf16>
    %c0_14 = arith.constant 0 : index
    %c0_15 = arith.constant 0 : index
    %c0_16 = arith.constant 0 : index
    %32 = vector.load %arg5[%c0_14, %c0_15, %c0_16] : memref<6x32x32xbf16, #tpu.memory_space<vmem>>, vector<1x32x32xbf16>
    %33 = vector.shape_cast %32 : vector<1x32x32xbf16> to vector<32x32xbf16>
    %c0_17 = arith.constant 0 : index
    %c0_18 = arith.constant 0 : index
    %c0_19 = arith.constant 0 : index
    %34 = vector.load %arg6[%c0_17, %c0_18, %c0_19] : memref<6x32x32xbf16, #tpu.memory_space<vmem>>, vector<1x32x32xbf16>
    %35 = vector.shape_cast %34 : vector<1x32x32xbf16> to vector<32x32xbf16>
    %c0_20 = arith.constant 0 : index
    %c0_21 = arith.constant 0 : index
    %c0_22 = arith.constant 0 : index
    %36 = vector.load %arg7[%c0_20, %c0_21, %c0_22] : memref<6x3x32xf32, #tpu.memory_space<vmem>>, vector<1x3x32xf32>
    %37 = vector.shape_cast %36 : vector<1x3x32xf32> to vector<3x32xf32>
    %38 = vector.extract_strided_slice %37 {offsets = [0, 0], sizes = [1, 32], strides = [1, 1]} : vector<3x32xf32> to vector<1x32xf32>
    %39 = vector.extract_strided_slice %37 {offsets = [1, 0], sizes = [1, 32], strides = [1, 1]} : vector<3x32xf32> to vector<1x32xf32>
    %40 = vector.extract_strided_slice %37 {offsets = [2, 0], sizes = [1, 32], strides = [1, 1]} : vector<3x32xf32> to vector<1x32xf32>
    %41 = arith.truncf %27 : vector<16x32xf32> to vector<16x32xbf16>
    %cst_23 = arith.constant dense<0.000000e+00> : vector<16x64xf32>
    %42 = tpu.matmul %41, %31, %cst_23 {dimension_numbers = #tpu.dot_dimension_numbers<[1], [0], [0], [1], [0, 0, 1, 1], [], []>} : vector<16x32xbf16>, vector<32x64xbf16>, vector<16x64xf32> -> vector<16x64xf32>
    %43 = vector.extract_strided_slice %42 {offsets = [0, 0], sizes = [16, 32], strides = [1, 1]} : vector<16x64xf32> to vector<16x32xf32>
    %44 = vector.extract_strided_slice %42 {offsets = [0, 32], sizes = [16, 32], strides = [1, 1]} : vector<16x64xf32> to vector<16x32xf32>
    %45 = tpu.concatenate %43, %44 in 0 : vector<16x32xf32>, vector<16x32xf32> -> vector<32x32xf32>
    %46 = arith.truncf %45 : vector<32x32xf32> to vector<32x32xbf16>
    %cst_24 = arith.constant dense<0.000000e+00> : vector<48x32xf32>
    %47 = tpu.matmul %28, %46, %cst_24 {dimension_numbers = #tpu.dot_dimension_numbers<[1], [0], [0], [1], [0, 0, 1, 1], [], []>} : vector<48x32xbf16>, vector<32x32xbf16>, vector<48x32xf32> -> vector<48x32xf32>
    %48 = vector.broadcast %38 : vector<1x32xf32> to vector<48x32xf32>
    %49 = arith.addf %47, %48 : vector<48x32xf32>
    %cst_25 = arith.constant 0.000000e+00 : f32
    %50 = vector.broadcast %cst_25 : f32 to vector<48x32xf32>
    %51 = arith.maximumf %49, %50 : vector<48x32xf32>
    %52 = arith.truncf %51 : vector<48x32xf32> to vector<48x32xbf16>
    %cst_26 = arith.constant dense<0.000000e+00> : vector<48x32xf32>
    %53 = tpu.matmul %52, %33, %cst_26 {dimension_numbers = #tpu.dot_dimension_numbers<[1], [0], [0], [1], [0, 0, 1, 1], [], []>} : vector<48x32xbf16>, vector<32x32xbf16>, vector<48x32xf32> -> vector<48x32xf32>
    %54 = vector.broadcast %39 : vector<1x32xf32> to vector<48x32xf32>
    %55 = arith.addf %53, %54 : vector<48x32xf32>
    %cst_27 = arith.constant 0.000000e+00 : f32
    %56 = vector.broadcast %cst_27 : f32 to vector<48x32xf32>
    %57 = arith.maximumf %55, %56 : vector<48x32xf32>
    %58 = arith.truncf %57 : vector<48x32xf32> to vector<48x32xbf16>
    %cst_28 = arith.constant dense<0.000000e+00> : vector<48x32xf32>
    %59 = tpu.matmul %58, %35, %cst_28 {dimension_numbers = #tpu.dot_dimension_numbers<[1], [0], [0], [1], [0, 0, 1, 1], [], []>} : vector<48x32xbf16>, vector<32x32xbf16>, vector<48x32xf32> -> vector<48x32xf32>
    %60 = vector.broadcast %40 : vector<1x32xf32> to vector<48x32xf32>
    %61 = arith.addf %59, %60 : vector<48x32xf32>
    %cst_29 = arith.constant 0.000000e+00 : f32
    %62 = vector.broadcast %cst_29 : f32 to vector<48x32xf32>
    %63 = arith.maximumf %61, %62 : vector<48x32xf32>
    %cst_30 = arith.constant dense<0.000000e+00> : vector<16x32xf32>
    %64 = tpu.matmul %29, %63, %cst_30 {dimension_numbers = #tpu.dot_dimension_numbers<[1], [0], [0], [1], [0, 0, 1, 1], [], []>} : vector<16x48xf32>, vector<48x32xf32>, vector<16x32xf32> -> vector<16x32xf32>
    %c1 = arith.constant 1 : index
    %c0_31 = arith.constant 0 : index
    %c0_32 = arith.constant 0 : index
    %65 = vector.load %arg4[%c1, %c0_31, %c0_32] : memref<6x32x64xbf16, #tpu.memory_space<vmem>>, vector<1x32x64xbf16>
    %66 = vector.shape_cast %65 : vector<1x32x64xbf16> to vector<32x64xbf16>
    %c1_33 = arith.constant 1 : index
    %c0_34 = arith.constant 0 : index
    %c0_35 = arith.constant 0 : index
    %67 = vector.load %arg5[%c1_33, %c0_34, %c0_35] : memref<6x32x32xbf16, #tpu.memory_space<vmem>>, vector<1x32x32xbf16>
    %68 = vector.shape_cast %67 : vector<1x32x32xbf16> to vector<32x32xbf16>
    %c1_36 = arith.constant 1 : index
    %c0_37 = arith.constant 0 : index
    %c0_38 = arith.constant 0 : index
    %69 = vector.load %arg6[%c1_36, %c0_37, %c0_38] : memref<6x32x32xbf16, #tpu.memory_space<vmem>>, vector<1x32x32xbf16>
    %70 = vector.shape_cast %69 : vector<1x32x32xbf16> to vector<32x32xbf16>
    %c1_39 = arith.constant 1 : index
    %c0_40 = arith.constant 0 : index
    %c0_41 = arith.constant 0 : index
    %71 = vector.load %arg7[%c1_39, %c0_40, %c0_41] : memref<6x3x32xf32, #tpu.memory_space<vmem>>, vector<1x3x32xf32>
    %72 = vector.shape_cast %71 : vector<1x3x32xf32> to vector<3x32xf32>
    %73 = vector.extract_strided_slice %72 {offsets = [0, 0], sizes = [1, 32], strides = [1, 1]} : vector<3x32xf32> to vector<1x32xf32>
    %74 = vector.extract_strided_slice %72 {offsets = [1, 0], sizes = [1, 32], strides = [1, 1]} : vector<3x32xf32> to vector<1x32xf32>
    %75 = vector.extract_strided_slice %72 {offsets = [2, 0], sizes = [1, 32], strides = [1, 1]} : vector<3x32xf32> to vector<1x32xf32>
    %76 = arith.truncf %64 : vector<16x32xf32> to vector<16x32xbf16>
    %cst_42 = arith.constant dense<0.000000e+00> : vector<16x64xf32>
    %77 = tpu.matmul %76, %66, %cst_42 {dimension_numbers = #tpu.dot_dimension_numbers<[1], [0], [0], [1], [0, 0, 1, 1], [], []>} : vector<16x32xbf16>, vector<32x64xbf16>, vector<16x64xf32> -> vector<16x64xf32>
    %78 = vector.extract_strided_slice %77 {offsets = [0, 0], sizes = [16, 32], strides = [1, 1]} : vector<16x64xf32> to vector<16x32xf32>
    %79 = vector.extract_strided_slice %77 {offsets = [0, 32], sizes = [16, 32], strides = [1, 1]} : vector<16x64xf32> to vector<16x32xf32>
    %80 = tpu.concatenate %78, %79 in 0 : vector<16x32xf32>, vector<16x32xf32> -> vector<32x32xf32>
    %81 = arith.truncf %80 : vector<32x32xf32> to vector<32x32xbf16>
    %cst_43 = arith.constant dense<0.000000e+00> : vector<48x32xf32>
    %82 = tpu.matmul %28, %81, %cst_43 {dimension_numbers = #tpu.dot_dimension_numbers<[1], [0], [0], [1], [0, 0, 1, 1], [], []>} : vector<48x32xbf16>, vector<32x32xbf16>, vector<48x32xf32> -> vector<48x32xf32>
    %83 = vector.broadcast %73 : vector<1x32xf32> to vector<48x32xf32>
    %84 = arith.addf %82, %83 : vector<48x32xf32>
    %cst_44 = arith.constant 0.000000e+00 : f32
    %85 = vector.broadcast %cst_44 : f32 to vector<48x32xf32>
    %86 = arith.maximumf %84, %85 : vector<48x32xf32>
    %87 = arith.truncf %86 : vector<48x32xf32> to vector<48x32xbf16>
    %cst_45 = arith.constant dense<0.000000e+00> : vector<48x32xf32>
    %88 = tpu.matmul %87, %68, %cst_45 {dimension_numbers = #tpu.dot_dimension_numbers<[1], [0], [0], [1], [0, 0, 1, 1], [], []>} : vector<48x32xbf16>, vector<32x32xbf16>, vector<48x32xf32> -> vector<48x32xf32>
    %89 = vector.broadcast %74 : vector<1x32xf32> to vector<48x32xf32>
    %90 = arith.addf %88, %89 : vector<48x32xf32>
    %cst_46 = arith.constant 0.000000e+00 : f32
    %91 = vector.broadcast %cst_46 : f32 to vector<48x32xf32>
    %92 = arith.maximumf %90, %91 : vector<48x32xf32>
    %93 = arith.truncf %92 : vector<48x32xf32> to vector<48x32xbf16>
    %cst_47 = arith.constant dense<0.000000e+00> : vector<48x32xf32>
    %94 = tpu.matmul %93, %70, %cst_47 {dimension_numbers = #tpu.dot_dimension_numbers<[1], [0], [0], [1], [0, 0, 1, 1], [], []>} : vector<48x32xbf16>, vector<32x32xbf16>, vector<48x32xf32> -> vector<48x32xf32>
    %95 = vector.broadcast %75 : vector<1x32xf32> to vector<48x32xf32>
    %96 = arith.addf %94, %95 : vector<48x32xf32>
    %cst_48 = arith.constant 0.000000e+00 : f32
    %97 = vector.broadcast %cst_48 : f32 to vector<48x32xf32>
    %98 = arith.maximumf %96, %97 : vector<48x32xf32>
    %cst_49 = arith.constant dense<0.000000e+00> : vector<16x32xf32>
    %99 = tpu.matmul %29, %98, %cst_49 {dimension_numbers = #tpu.dot_dimension_numbers<[1], [0], [0], [1], [0, 0, 1, 1], [], []>} : vector<16x48xf32>, vector<48x32xf32>, vector<16x32xf32> -> vector<16x32xf32>
    %c2 = arith.constant 2 : index
    %c0_50 = arith.constant 0 : index
    %c0_51 = arith.constant 0 : index
    %100 = vector.load %arg4[%c2, %c0_50, %c0_51] : memref<6x32x64xbf16, #tpu.memory_space<vmem>>, vector<1x32x64xbf16>
    %101 = vector.shape_cast %100 : vector<1x32x64xbf16> to vector<32x64xbf16>
    %c2_52 = arith.constant 2 : index
    %c0_53 = arith.constant 0 : index
    %c0_54 = arith.constant 0 : index
    %102 = vector.load %arg5[%c2_52, %c0_53, %c0_54] : memref<6x32x32xbf16, #tpu.memory_space<vmem>>, vector<1x32x32xbf16>
    %103 = vector.shape_cast %102 : vector<1x32x32xbf16> to vector<32x32xbf16>
    %c2_55 = arith.constant 2 : index
    %c0_56 = arith.constant 0 : index
    %c0_57 = arith.constant 0 : index
    %104 = vector.load %arg6[%c2_55, %c0_56, %c0_57] : memref<6x32x32xbf16, #tpu.memory_space<vmem>>, vector<1x32x32xbf16>
    %105 = vector.shape_cast %104 : vector<1x32x32xbf16> to vector<32x32xbf16>
    %c2_58 = arith.constant 2 : index
    %c0_59 = arith.constant 0 : index
    %c0_60 = arith.constant 0 : index
    %106 = vector.load %arg7[%c2_58, %c0_59, %c0_60] : memref<6x3x32xf32, #tpu.memory_space<vmem>>, vector<1x3x32xf32>
    %107 = vector.shape_cast %106 : vector<1x3x32xf32> to vector<3x32xf32>
    %108 = vector.extract_strided_slice %107 {offsets = [0, 0], sizes = [1, 32], strides = [1, 1]} : vector<3x32xf32> to vector<1x32xf32>
    %109 = vector.extract_strided_slice %107 {offsets = [1, 0], sizes = [1, 32], strides = [1, 1]} : vector<3x32xf32> to vector<1x32xf32>
    %110 = vector.extract_strided_slice %107 {offsets = [2, 0], sizes = [1, 32], strides = [1, 1]} : vector<3x32xf32> to vector<1x32xf32>
    %111 = arith.truncf %99 : vector<16x32xf32> to vector<16x32xbf16>
    %cst_61 = arith.constant dense<0.000000e+00> : vector<16x64xf32>
    %112 = tpu.matmul %111, %101, %cst_61 {dimension_numbers = #tpu.dot_dimension_numbers<[1], [0], [0], [1], [0, 0, 1, 1], [], []>} : vector<16x32xbf16>, vector<32x64xbf16>, vector<16x64xf32> -> vector<16x64xf32>
    %113 = vector.extract_strided_slice %112 {offsets = [0, 0], sizes = [16, 32], strides = [1, 1]} : vector<16x64xf32> to vector<16x32xf32>
    %114 = vector.extract_strided_slice %112 {offsets = [0, 32], sizes = [16, 32], strides = [1, 1]} : vector<16x64xf32> to vector<16x32xf32>
    %115 = tpu.concatenate %113, %114 in 0 : vector<16x32xf32>, vector<16x32xf32> -> vector<32x32xf32>
    %116 = arith.truncf %115 : vector<32x32xf32> to vector<32x32xbf16>
    %cst_62 = arith.constant dense<0.000000e+00> : vector<48x32xf32>
    %117 = tpu.matmul %28, %116, %cst_62 {dimension_numbers = #tpu.dot_dimension_numbers<[1], [0], [0], [1], [0, 0, 1, 1], [], []>} : vector<48x32xbf16>, vector<32x32xbf16>, vector<48x32xf32> -> vector<48x32xf32>
    %118 = vector.broadcast %108 : vector<1x32xf32> to vector<48x32xf32>
    %119 = arith.addf %117, %118 : vector<48x32xf32>
    %cst_63 = arith.constant 0.000000e+00 : f32
    %120 = vector.broadcast %cst_63 : f32 to vector<48x32xf32>
    %121 = arith.maximumf %119, %120 : vector<48x32xf32>
    %122 = arith.truncf %121 : vector<48x32xf32> to vector<48x32xbf16>
    %cst_64 = arith.constant dense<0.000000e+00> : vector<48x32xf32>
    %123 = tpu.matmul %122, %103, %cst_64 {dimension_numbers = #tpu.dot_dimension_numbers<[1], [0], [0], [1], [0, 0, 1, 1], [], []>} : vector<48x32xbf16>, vector<32x32xbf16>, vector<48x32xf32> -> vector<48x32xf32>
    %124 = vector.broadcast %109 : vector<1x32xf32> to vector<48x32xf32>
    %125 = arith.addf %123, %124 : vector<48x32xf32>
    %cst_65 = arith.constant 0.000000e+00 : f32
    %126 = vector.broadcast %cst_65 : f32 to vector<48x32xf32>
    %127 = arith.maximumf %125, %126 : vector<48x32xf32>
    %128 = arith.truncf %127 : vector<48x32xf32> to vector<48x32xbf16>
    %cst_66 = arith.constant dense<0.000000e+00> : vector<48x32xf32>
    %129 = tpu.matmul %128, %105, %cst_66 {dimension_numbers = #tpu.dot_dimension_numbers<[1], [0], [0], [1], [0, 0, 1, 1], [], []>} : vector<48x32xbf16>, vector<32x32xbf16>, vector<48x32xf32> -> vector<48x32xf32>
    %130 = vector.broadcast %110 : vector<1x32xf32> to vector<48x32xf32>
    %131 = arith.addf %129, %130 : vector<48x32xf32>
    %cst_67 = arith.constant 0.000000e+00 : f32
    %132 = vector.broadcast %cst_67 : f32 to vector<48x32xf32>
    %133 = arith.maximumf %131, %132 : vector<48x32xf32>
    %cst_68 = arith.constant dense<0.000000e+00> : vector<16x32xf32>
    %134 = tpu.matmul %29, %133, %cst_68 {dimension_numbers = #tpu.dot_dimension_numbers<[1], [0], [0], [1], [0, 0, 1, 1], [], []>} : vector<16x48xf32>, vector<48x32xf32>, vector<16x32xf32> -> vector<16x32xf32>
    %c3 = arith.constant 3 : index
    %c0_69 = arith.constant 0 : index
    %c0_70 = arith.constant 0 : index
    %135 = vector.load %arg4[%c3, %c0_69, %c0_70] : memref<6x32x64xbf16, #tpu.memory_space<vmem>>, vector<1x32x64xbf16>
    %136 = vector.shape_cast %135 : vector<1x32x64xbf16> to vector<32x64xbf16>
    %c3_71 = arith.constant 3 : index
    %c0_72 = arith.constant 0 : index
    %c0_73 = arith.constant 0 : index
    %137 = vector.load %arg5[%c3_71, %c0_72, %c0_73] : memref<6x32x32xbf16, #tpu.memory_space<vmem>>, vector<1x32x32xbf16>
    %138 = vector.shape_cast %137 : vector<1x32x32xbf16> to vector<32x32xbf16>
    %c3_74 = arith.constant 3 : index
    %c0_75 = arith.constant 0 : index
    %c0_76 = arith.constant 0 : index
    %139 = vector.load %arg6[%c3_74, %c0_75, %c0_76] : memref<6x32x32xbf16, #tpu.memory_space<vmem>>, vector<1x32x32xbf16>
    %140 = vector.shape_cast %139 : vector<1x32x32xbf16> to vector<32x32xbf16>
    %c3_77 = arith.constant 3 : index
    %c0_78 = arith.constant 0 : index
    %c0_79 = arith.constant 0 : index
    %141 = vector.load %arg7[%c3_77, %c0_78, %c0_79] : memref<6x3x32xf32, #tpu.memory_space<vmem>>, vector<1x3x32xf32>
    %142 = vector.shape_cast %141 : vector<1x3x32xf32> to vector<3x32xf32>
    %143 = vector.extract_strided_slice %142 {offsets = [0, 0], sizes = [1, 32], strides = [1, 1]} : vector<3x32xf32> to vector<1x32xf32>
    %144 = vector.extract_strided_slice %142 {offsets = [1, 0], sizes = [1, 32], strides = [1, 1]} : vector<3x32xf32> to vector<1x32xf32>
    %145 = vector.extract_strided_slice %142 {offsets = [2, 0], sizes = [1, 32], strides = [1, 1]} : vector<3x32xf32> to vector<1x32xf32>
    %146 = arith.truncf %134 : vector<16x32xf32> to vector<16x32xbf16>
    %cst_80 = arith.constant dense<0.000000e+00> : vector<16x64xf32>
    %147 = tpu.matmul %146, %136, %cst_80 {dimension_numbers = #tpu.dot_dimension_numbers<[1], [0], [0], [1], [0, 0, 1, 1], [], []>} : vector<16x32xbf16>, vector<32x64xbf16>, vector<16x64xf32> -> vector<16x64xf32>
    %148 = vector.extract_strided_slice %147 {offsets = [0, 0], sizes = [16, 32], strides = [1, 1]} : vector<16x64xf32> to vector<16x32xf32>
    %149 = vector.extract_strided_slice %147 {offsets = [0, 32], sizes = [16, 32], strides = [1, 1]} : vector<16x64xf32> to vector<16x32xf32>
    %150 = tpu.concatenate %148, %149 in 0 : vector<16x32xf32>, vector<16x32xf32> -> vector<32x32xf32>
    %151 = arith.truncf %150 : vector<32x32xf32> to vector<32x32xbf16>
    %cst_81 = arith.constant dense<0.000000e+00> : vector<48x32xf32>
    %152 = tpu.matmul %28, %151, %cst_81 {dimension_numbers = #tpu.dot_dimension_numbers<[1], [0], [0], [1], [0, 0, 1, 1], [], []>} : vector<48x32xbf16>, vector<32x32xbf16>, vector<48x32xf32> -> vector<48x32xf32>
    %153 = vector.broadcast %143 : vector<1x32xf32> to vector<48x32xf32>
    %154 = arith.addf %152, %153 : vector<48x32xf32>
    %cst_82 = arith.constant 0.000000e+00 : f32
    %155 = vector.broadcast %cst_82 : f32 to vector<48x32xf32>
    %156 = arith.maximumf %154, %155 : vector<48x32xf32>
    %157 = arith.truncf %156 : vector<48x32xf32> to vector<48x32xbf16>
    %cst_83 = arith.constant dense<0.000000e+00> : vector<48x32xf32>
    %158 = tpu.matmul %157, %138, %cst_83 {dimension_numbers = #tpu.dot_dimension_numbers<[1], [0], [0], [1], [0, 0, 1, 1], [], []>} : vector<48x32xbf16>, vector<32x32xbf16>, vector<48x32xf32> -> vector<48x32xf32>
    %159 = vector.broadcast %144 : vector<1x32xf32> to vector<48x32xf32>
    %160 = arith.addf %158, %159 : vector<48x32xf32>
    %cst_84 = arith.constant 0.000000e+00 : f32
    %161 = vector.broadcast %cst_84 : f32 to vector<48x32xf32>
    %162 = arith.maximumf %160, %161 : vector<48x32xf32>
    %163 = arith.truncf %162 : vector<48x32xf32> to vector<48x32xbf16>
    %cst_85 = arith.constant dense<0.000000e+00> : vector<48x32xf32>
    %164 = tpu.matmul %163, %140, %cst_85 {dimension_numbers = #tpu.dot_dimension_numbers<[1], [0], [0], [1], [0, 0, 1, 1], [], []>} : vector<48x32xbf16>, vector<32x32xbf16>, vector<48x32xf32> -> vector<48x32xf32>
    %165 = vector.broadcast %145 : vector<1x32xf32> to vector<48x32xf32>
    %166 = arith.addf %164, %165 : vector<48x32xf32>
    %cst_86 = arith.constant 0.000000e+00 : f32
    %167 = vector.broadcast %cst_86 : f32 to vector<48x32xf32>
    %168 = arith.maximumf %166, %167 : vector<48x32xf32>
    %cst_87 = arith.constant dense<0.000000e+00> : vector<16x32xf32>
    %169 = tpu.matmul %29, %168, %cst_87 {dimension_numbers = #tpu.dot_dimension_numbers<[1], [0], [0], [1], [0, 0, 1, 1], [], []>} : vector<16x48xf32>, vector<48x32xf32>, vector<16x32xf32> -> vector<16x32xf32>
    %c4 = arith.constant 4 : index
    %c0_88 = arith.constant 0 : index
    %c0_89 = arith.constant 0 : index
    %170 = vector.load %arg4[%c4, %c0_88, %c0_89] : memref<6x32x64xbf16, #tpu.memory_space<vmem>>, vector<1x32x64xbf16>
    %171 = vector.shape_cast %170 : vector<1x32x64xbf16> to vector<32x64xbf16>
    %c4_90 = arith.constant 4 : index
    %c0_91 = arith.constant 0 : index
    %c0_92 = arith.constant 0 : index
    %172 = vector.load %arg5[%c4_90, %c0_91, %c0_92] : memref<6x32x32xbf16, #tpu.memory_space<vmem>>, vector<1x32x32xbf16>
    %173 = vector.shape_cast %172 : vector<1x32x32xbf16> to vector<32x32xbf16>
    %c4_93 = arith.constant 4 : index
    %c0_94 = arith.constant 0 : index
    %c0_95 = arith.constant 0 : index
    %174 = vector.load %arg6[%c4_93, %c0_94, %c0_95] : memref<6x32x32xbf16, #tpu.memory_space<vmem>>, vector<1x32x32xbf16>
    %175 = vector.shape_cast %174 : vector<1x32x32xbf16> to vector<32x32xbf16>
    %c4_96 = arith.constant 4 : index
    %c0_97 = arith.constant 0 : index
    %c0_98 = arith.constant 0 : index
    %176 = vector.load %arg7[%c4_96, %c0_97, %c0_98] : memref<6x3x32xf32, #tpu.memory_space<vmem>>, vector<1x3x32xf32>
    %177 = vector.shape_cast %176 : vector<1x3x32xf32> to vector<3x32xf32>
    %178 = vector.extract_strided_slice %177 {offsets = [0, 0], sizes = [1, 32], strides = [1, 1]} : vector<3x32xf32> to vector<1x32xf32>
    %179 = vector.extract_strided_slice %177 {offsets = [1, 0], sizes = [1, 32], strides = [1, 1]} : vector<3x32xf32> to vector<1x32xf32>
    %180 = vector.extract_strided_slice %177 {offsets = [2, 0], sizes = [1, 32], strides = [1, 1]} : vector<3x32xf32> to vector<1x32xf32>
    %181 = arith.truncf %169 : vector<16x32xf32> to vector<16x32xbf16>
    %cst_99 = arith.constant dense<0.000000e+00> : vector<16x64xf32>
    %182 = tpu.matmul %181, %171, %cst_99 {dimension_numbers = #tpu.dot_dimension_numbers<[1], [0], [0], [1], [0, 0, 1, 1], [], []>} : vector<16x32xbf16>, vector<32x64xbf16>, vector<16x64xf32> -> vector<16x64xf32>
    %183 = vector.extract_strided_slice %182 {offsets = [0, 0], sizes = [16, 32], strides = [1, 1]} : vector<16x64xf32> to vector<16x32xf32>
    %184 = vector.extract_strided_slice %182 {offsets = [0, 32], sizes = [16, 32], strides = [1, 1]} : vector<16x64xf32> to vector<16x32xf32>
    %185 = tpu.concatenate %183, %184 in 0 : vector<16x32xf32>, vector<16x32xf32> -> vector<32x32xf32>
    %186 = arith.truncf %185 : vector<32x32xf32> to vector<32x32xbf16>
    %cst_100 = arith.constant dense<0.000000e+00> : vector<48x32xf32>
    %187 = tpu.matmul %28, %186, %cst_100 {dimension_numbers = #tpu.dot_dimension_numbers<[1], [0], [0], [1], [0, 0, 1, 1], [], []>} : vector<48x32xbf16>, vector<32x32xbf16>, vector<48x32xf32> -> vector<48x32xf32>
    %188 = vector.broadcast %178 : vector<1x32xf32> to vector<48x32xf32>
    %189 = arith.addf %187, %188 : vector<48x32xf32>
    %cst_101 = arith.constant 0.000000e+00 : f32
    %190 = vector.broadcast %cst_101 : f32 to vector<48x32xf32>
    %191 = arith.maximumf %189, %190 : vector<48x32xf32>
    %192 = arith.truncf %191 : vector<48x32xf32> to vector<48x32xbf16>
    %cst_102 = arith.constant dense<0.000000e+00> : vector<48x32xf32>
    %193 = tpu.matmul %192, %173, %cst_102 {dimension_numbers = #tpu.dot_dimension_numbers<[1], [0], [0], [1], [0, 0, 1, 1], [], []>} : vector<48x32xbf16>, vector<32x32xbf16>, vector<48x32xf32> -> vector<48x32xf32>
    %194 = vector.broadcast %179 : vector<1x32xf32> to vector<48x32xf32>
    %195 = arith.addf %193, %194 : vector<48x32xf32>
    %cst_103 = arith.constant 0.000000e+00 : f32
    %196 = vector.broadcast %cst_103 : f32 to vector<48x32xf32>
    %197 = arith.maximumf %195, %196 : vector<48x32xf32>
    %198 = arith.truncf %197 : vector<48x32xf32> to vector<48x32xbf16>
    %cst_104 = arith.constant dense<0.000000e+00> : vector<48x32xf32>
    %199 = tpu.matmul %198, %175, %cst_104 {dimension_numbers = #tpu.dot_dimension_numbers<[1], [0], [0], [1], [0, 0, 1, 1], [], []>} : vector<48x32xbf16>, vector<32x32xbf16>, vector<48x32xf32> -> vector<48x32xf32>
    %200 = vector.broadcast %180 : vector<1x32xf32> to vector<48x32xf32>
    %201 = arith.addf %199, %200 : vector<48x32xf32>
    %cst_105 = arith.constant 0.000000e+00 : f32
    %202 = vector.broadcast %cst_105 : f32 to vector<48x32xf32>
    %203 = arith.maximumf %201, %202 : vector<48x32xf32>
    %cst_106 = arith.constant dense<0.000000e+00> : vector<16x32xf32>
    %204 = tpu.matmul %29, %203, %cst_106 {dimension_numbers = #tpu.dot_dimension_numbers<[1], [0], [0], [1], [0, 0, 1, 1], [], []>} : vector<16x48xf32>, vector<48x32xf32>, vector<16x32xf32> -> vector<16x32xf32>
    %c5 = arith.constant 5 : index
    %c0_107 = arith.constant 0 : index
    %c0_108 = arith.constant 0 : index
    %205 = vector.load %arg4[%c5, %c0_107, %c0_108] : memref<6x32x64xbf16, #tpu.memory_space<vmem>>, vector<1x32x64xbf16>
    %206 = vector.shape_cast %205 : vector<1x32x64xbf16> to vector<32x64xbf16>
    %c5_109 = arith.constant 5 : index
    %c0_110 = arith.constant 0 : index
    %c0_111 = arith.constant 0 : index
    %207 = vector.load %arg5[%c5_109, %c0_110, %c0_111] : memref<6x32x32xbf16, #tpu.memory_space<vmem>>, vector<1x32x32xbf16>
    %208 = vector.shape_cast %207 : vector<1x32x32xbf16> to vector<32x32xbf16>
    %c5_112 = arith.constant 5 : index
    %c0_113 = arith.constant 0 : index
    %c0_114 = arith.constant 0 : index
    %209 = vector.load %arg6[%c5_112, %c0_113, %c0_114] : memref<6x32x32xbf16, #tpu.memory_space<vmem>>, vector<1x32x32xbf16>
    %210 = vector.shape_cast %209 : vector<1x32x32xbf16> to vector<32x32xbf16>
    %c5_115 = arith.constant 5 : index
    %c0_116 = arith.constant 0 : index
    %c0_117 = arith.constant 0 : index
    %211 = vector.load %arg7[%c5_115, %c0_116, %c0_117] : memref<6x3x32xf32, #tpu.memory_space<vmem>>, vector<1x3x32xf32>
    %212 = vector.shape_cast %211 : vector<1x3x32xf32> to vector<3x32xf32>
    %213 = vector.extract_strided_slice %212 {offsets = [0, 0], sizes = [1, 32], strides = [1, 1]} : vector<3x32xf32> to vector<1x32xf32>
    %214 = vector.extract_strided_slice %212 {offsets = [1, 0], sizes = [1, 32], strides = [1, 1]} : vector<3x32xf32> to vector<1x32xf32>
    %215 = vector.extract_strided_slice %212 {offsets = [2, 0], sizes = [1, 32], strides = [1, 1]} : vector<3x32xf32> to vector<1x32xf32>
    %216 = arith.truncf %204 : vector<16x32xf32> to vector<16x32xbf16>
    %cst_118 = arith.constant dense<0.000000e+00> : vector<16x64xf32>
    %217 = tpu.matmul %216, %206, %cst_118 {dimension_numbers = #tpu.dot_dimension_numbers<[1], [0], [0], [1], [0, 0, 1, 1], [], []>} : vector<16x32xbf16>, vector<32x64xbf16>, vector<16x64xf32> -> vector<16x64xf32>
    %218 = vector.extract_strided_slice %217 {offsets = [0, 0], sizes = [16, 32], strides = [1, 1]} : vector<16x64xf32> to vector<16x32xf32>
    %219 = vector.extract_strided_slice %217 {offsets = [0, 32], sizes = [16, 32], strides = [1, 1]} : vector<16x64xf32> to vector<16x32xf32>
    %220 = tpu.concatenate %218, %219 in 0 : vector<16x32xf32>, vector<16x32xf32> -> vector<32x32xf32>
    %221 = arith.truncf %220 : vector<32x32xf32> to vector<32x32xbf16>
    %cst_119 = arith.constant dense<0.000000e+00> : vector<48x32xf32>
    %222 = tpu.matmul %28, %221, %cst_119 {dimension_numbers = #tpu.dot_dimension_numbers<[1], [0], [0], [1], [0, 0, 1, 1], [], []>} : vector<48x32xbf16>, vector<32x32xbf16>, vector<48x32xf32> -> vector<48x32xf32>
    %223 = vector.broadcast %213 : vector<1x32xf32> to vector<48x32xf32>
    %224 = arith.addf %222, %223 : vector<48x32xf32>
    %cst_120 = arith.constant 0.000000e+00 : f32
    %225 = vector.broadcast %cst_120 : f32 to vector<48x32xf32>
    %226 = arith.maximumf %224, %225 : vector<48x32xf32>
    %227 = arith.truncf %226 : vector<48x32xf32> to vector<48x32xbf16>
    %cst_121 = arith.constant dense<0.000000e+00> : vector<48x32xf32>
    %228 = tpu.matmul %227, %208, %cst_121 {dimension_numbers = #tpu.dot_dimension_numbers<[1], [0], [0], [1], [0, 0, 1, 1], [], []>} : vector<48x32xbf16>, vector<32x32xbf16>, vector<48x32xf32> -> vector<48x32xf32>
    %229 = vector.broadcast %214 : vector<1x32xf32> to vector<48x32xf32>
    %230 = arith.addf %228, %229 : vector<48x32xf32>
    %cst_122 = arith.constant 0.000000e+00 : f32
    %231 = vector.broadcast %cst_122 : f32 to vector<48x32xf32>
    %232 = arith.maximumf %230, %231 : vector<48x32xf32>
    %233 = arith.truncf %232 : vector<48x32xf32> to vector<48x32xbf16>
    %cst_123 = arith.constant dense<0.000000e+00> : vector<48x32xf32>
    %234 = tpu.matmul %233, %210, %cst_123 {dimension_numbers = #tpu.dot_dimension_numbers<[1], [0], [0], [1], [0, 0, 1, 1], [], []>} : vector<48x32xbf16>, vector<32x32xbf16>, vector<48x32xf32> -> vector<48x32xf32>
    %235 = vector.broadcast %215 : vector<1x32xf32> to vector<48x32xf32>
    %236 = arith.addf %234, %235 : vector<48x32xf32>
    %cst_124 = arith.constant dense<0.000000e+00> : vector<16x32xf32>
    %237 = tpu.matmul %29, %236, %cst_124 {dimension_numbers = #tpu.dot_dimension_numbers<[1], [0], [0], [1], [0, 0, 1, 1], [], []>} : vector<16x48xf32>, vector<48x32xf32>, vector<16x32xf32> -> vector<16x32xf32>
    %c0_125 = arith.constant 0 : index
    %c0_126 = arith.constant 0 : index
    %238 = vector.load %arg8[%c0_125, %c0_126] : memref<16x32xf32, #tpu.memory_space<vmem>>, vector<16x32xf32>
    tpu.vector_store %arg8[%c0_125, %c0_126], %237 {strides = array<i32>} : memref<16x32xf32, #tpu.memory_space<vmem>>, vector<16x32xf32>,
    return
  }
}

</mosaic_0001>

<bundles_post_ra>
// kernel: edgenet_deeper3_forward.1
= control target key start
LH: loop header
LB: loop body
LE: loop exit
PB: predicated region body
PF: predicated region fallthrough
CT: control target
= control target key end

     0   :  { %vm33_vm0 = vcmask 261120   ;;  %v1830_v2 = vmov 16.0   ;;  %s1831_s14 = smov 96   ;;  %vm310_vm5 = vcmask 392192   ;;  %s2167_s4 = inlined_call_operand.vmem [shape: bf16[6,32,64], index: 4, kind: input, shape index: {}]   ;;  %s2168_s0 = inlined_call_operand.vmem [shape: f32[16,32], index: 0, kind: input, shape index: {}]   ;;  %s2169_s3 = inlined_call_operand.vmem [shape: f32[2,32], index: 3, kind: input, shape index: {}]   ;;  %s2170_s1 = inlined_call_operand.vmem [shape: bf16[48,32], index: 1, kind: input, shape index: {}]   ;;  %s2171_s5 = inlined_call_operand.vmem [shape: bf16[6,32,32], index: 5, kind: input, shape index: {}]   ;;  %s2172_s7 = inlined_call_operand.vmem [shape: f32[6,3,32], index: 7, kind: input, shape index: {}]   ;;  %s2173_s6 = inlined_call_operand.vmem [shape: bf16[6,32,32], index: 6, kind: input, shape index: {}]   ;;  %s2174_s2 = inlined_call_operand.vmem [shape: f32[16,48], index: 2, kind: input, shape index: {}]   ;;  %s2175_s8 = inlined_call_operand.vmem [shape: f32[16,32], index: 8, kind: output, shape index: {}]  }
   0x1   :  { %v1742_v0 = vld [vmem:[%s2167_s4 + $0x8] sm:$0xff]  ;;  %v30_v1 = vld [vmem:[%s2168_s0] sm:$0xff]  ;;  %1821 = vrcp.f32 %v1830_v2  ;;  %v1915_v63 = vld [vmem:[%s2170_s1 + $0x10] sm:$0xff] }
   0x2   :  { %v31_v3 = vld [vmem:[%s2168_s0 + $0x8] sm:$0xff]  ;;  %v34_v4 = vsel %vm33_vm0, %v30_v1, 0.0  ;;  %127 = vmatpush.bf16.msra.mxu0 %v1742_v0  ;;  %v1741_v5 = vld [vmem:[%s2167_s4] sm:$0xff] }
   0x3   :  { %v35_v6 = vsel %vm33_vm0, %v31_v3, 0.0  ;;  %v32_v40 = vld [vmem:[%s2169_s3] sm:$0x3]  ;;  %v1908_v62 = vld [vmem:[%s2170_s1 + $0x8] sm:$0xff] }
   0x4   :  { %v36_v7 = vadd.f32 %v35_v6, %v34_v4  ;;  %v78_v43 = vperm.slane %v32_v40, 0  ;;  %v81_v47 = vperm.slane %v32_v40, 1  ;;  %v1901_v61 = vld [vmem:[%s2170_s1] sm:$0xff]  ;;  %v1744_v0 = vld [vmem:[%s2171_s5 + $0x8] sm:$0xff] }
   0x5   :  { %231 = vmatpush.bf16.msra.mxu2 %v1744_v0  ;;  %v104_v2 = vld [vmem:[%s2172_s7] sm:$0x7] }
   0x6   :  { %v37_v8 = vrot.slane %v36_v7, 4  ;;  %128 = vmatpush.bf16.msra.mxu0 %v1741_v5  ;;  %v145_v4 = vperm.slane %v104_v2, 0 }
   0x7   :  { %v1822_v9 = vpop.eup %1821 }
   0x8   :  { %v38_v10 = vadd.f32 %v37_v8, %v36_v7  ;;  %v44_v11 = vmul.f32 16.0, %v1822_v9  ;;  %vm48_vm1 = vweird.f32 %v1822_v9 }
   0xa   :  { %v39_v12 = vrot.slane %v38_v10, 2  ;;  %v45_v13 = vsub.f32 1.0, %v44_v11 }
   0xc   :  { %v40_v14 = vadd.f32 %v39_v12, %v38_v10  ;;  %v46_v15 = vmul.f32 %v1822_v9, %v45_v13 }
   0xe   :  { %v41_v16 = vrot.slane %v40_v14, 1  ;;  %v47_v17 = vadd.f32 %v1822_v9, %v46_v15 }
  0x10   :  { %v42_v18 = vadd.f32 %v41_v16, %v40_v14  ;;  %v49_v19 = vsel %vm48_vm1, %v1822_v9, %v47_v17 }
  0x12   :  { %v50_v20 = vmul.f32 %v49_v19, %v42_v18 }
  0x14   :  { %v51_v21 = vsub.f32 %v30_v1, %v50_v20  ;;  %v52_v22 = vsub.f32 %v31_v3, %v50_v20  ;;  %v1743_v1 = vld [vmem:[%s2171_s5] sm:$0xff] }
  0x15   :  { %232 = vmatpush.bf16.msra.mxu2 %v1743_v1 }
  0x16   :  { %v53_v23 = vmul.f32 %v51_v21, %v51_v21  ;;  %v54_v24 = vmul.f32 %v52_v22, %v52_v22 }
  0x18   :  { %v55_v25 = vsel %vm33_vm0, %v53_v23, 0.0  ;;  %v56_v26 = vsel %vm33_vm0, %v54_v24, 0.0 }
  0x19   :  { %v57_v27 = vadd.f32 %v56_v26, %v55_v25  ;;  %v1746_v25 = vld [vmem:[%s2173_s6 + $0x8] sm:$0xff]  ;;  %v1745_v26 = vld [vmem:[%s2173_s6] sm:$0xff] }
  0x1a   :  { %286 = vmatpush.bf16.msra.mxu3 %v1746_v25 }
  0x1b   :  { %v58_v28 = vrot.slane %v57_v27, 4 }
  0x1d   :  { %v59_v29 = vadd.f32 %v58_v28, %v57_v27  ;;  %v203_v28 = vperm.slane %v104_v2, 1 }
  0x1e   :  { %287 = vmatpush.bf16.msra.mxu3 %v1745_v26 }
  0x1f   :  { %v60_v30 = vrot.slane %v59_v29, 2 }
  0x21   :  { %v61_v31 = vadd.f32 %v60_v30, %v59_v29 }
  0x23   :  { %v62_v32 = vrot.slane %v61_v31, 1 }
  0x25   :  { %v63_v33 = vadd.f32 %v62_v32, %v61_v31 }
  0x27   :  { %v64_v34 = vmul.f32 %v63_v33, %v49_v19 }
  0x29   :  { %v65_v35 = vadd.f32 1e-05, %v64_v34 }
  0x2b   :  { %1823 = vrsqrt.f32 %v65_v35  ;;  %vm72_vm2 = vweird.f32 %v65_v35 }
  0x31   :  { %v1824_v36 = vpop.eup %1823 }
  0x32   :  { %v67_v37 = vmul.f32 %v1824_v36, %v65_v35  ;;  %vm73_vm3 = vweird.f32 %v1824_v36 }
  0x33   :  { %vm74_vm4 = vmor %vm72_vm2, %vm73_vm3 }
  0x34   :  { %v68_v38 = vmul.f32 %v1824_v36, %v67_v37 }
  0x36   :  { %v69_v39 = vmul.f32 0.5, %v68_v38 }
  0x38   :  { %v70_v41 = vsub.f32 1.5, %v69_v39 }
  0x3a   :  { %v71_v42 = vmul.f32 %v1824_v36, %v70_v41 }
  0x3c   :  { %v75_v44 = vsel %vm74_vm4, %v1824_v36, %v71_v42 }
  0x3d   :  { %v76_v45 = vmul.f32 %v75_v44, %v51_v21  ;;  %v77_v46 = vmul.f32 %v75_v44, %v52_v22 }
  0x3f   :  { %v79_v48 = vmul.f32 %v78_v43, %v76_v45  ;;  %v80_v49 = vmul.f32 %v78_v43, %v77_v46 }
  0x41   :  { %v82_v50 = vadd.f32 %v81_v47, %v79_v48  ;;  %v83_v51 = vadd.f32 %v81_v47, %v80_v49 }
  0x43   :  { %v105_v52 = vpack.c.bf16 %v83_v51, %v82_v50 }
  0x45   :  { %1453 = vmatmul.msk.bf16.vlgmr.msra.gmra.mxu0 %vm33_vm0, %v105_v52 }
  0xc2   :  { %v130_v53 = vpop.f32.mrf.mxu0 }
  0xca   :  { %v132_v54 = vpop.f32.mrf.mxu0 }
  0xcb   :  { %v1791_v55 = vpack.i.bf16 %v132_v54, %v130_v53  ;;  %v143_v60 = vpack.c.bf16 %v132_v54, %v130_v53  ;;  %v258_v54 = vperm.slane %v104_v2, 2  ;;  %v1943_v2 = vld [vmem:[%s2174_s2] sm:$0xff] }
  0xcd   :  { %1792 = vrot.lane.b32.xlu0 %v1791_v55, %s1831_s14 }
 0x13f   :  { %v1793_v56 = vpop.permute.xlu0 %1792 }
 0x140   :  { %v1795_v57 = vunpack.i.h.bf16 %v1793_v56  ;;  %v1794_v58 = vunpack.i.l.bf16 %v1793_v56 }
 0x142   :  { %v144_v59 = vpack.c.bf16 %v1795_v57, %v1794_v58 }
 0x144   :  { %176 = vmatpush.bf16.msra.mxu1 %v144_v59 }
 0x148   :  { %177 = vmatpush.bf16.msra.mxu1 %v143_v60 }
 0x14b   :  { %1466 = vmatmul.msk.bf16.vlgmr.msra.gmra.mxu1 %vm33_vm0, %v1901_v61 }
 0x15b   :  { %1467 = vmatmul.msk.bf16.gmra.mxu1 %vm33_vm0, %v1908_v62 }
 0x16b   :  { %1468 = vmatmul.msk.bf16.gmra.mxu1 %vm33_vm0, %v1915_v63 }
 0x1c8   :  { %v179_v3 = vpop.f32.mrf.mxu1 }
 0x1c9   :  { %v180_v5 = vadd.f32 %v179_v3, %v145_v4 }
 0x1cb   :  { %v194_v8 = vmax.f32 %v180_v5, 0.0 }
 0x1d0   :  { %v181_v6 = vpop.f32.mrf.mxu1 }
 0x1d1   :  { %v182_v7 = vadd.f32 %v181_v6, %v145_v4 }
 0x1d3   :  { %v195_v9 = vmax.f32 %v182_v7, 0.0 }
 0x1d5   :  { %v200_v10 = vpack.c.bf16 %v195_v9, %v194_v8  ;;  %v1950_v8 = vld [vmem:[%s2174_s2 + $0x8] sm:$0xff]  ;;  %v1748_v9 = vld [vmem:[%s2167_s4 + $0x18] sm:$0xff] }
 0x1d6   :  { %379 = vmatpush.bf16.msrb.mxu0 %v1748_v9 }
 0x1d7   :  { %1477 = vmatmul.msk.bf16.vlgmr.msra.gmra.mxu2 %vm33_vm0, %v200_v10  ;;  %v1747_v10 = vld [vmem:[%s2167_s4 + $0x10] sm:$0xff] }
 0x1d8   :  { %v184_v11 = vpop.f32.mrf.mxu1 }
 0x1d9   :  { %v185_v12 = vadd.f32 %v184_v11, %v145_v4 }
 0x1da   :  { %380 = vmatpush.bf16.msrb.mxu0 %v1747_v10 }
 0x1db   :  { %v196_v15 = vmax.f32 %v185_v12, 0.0 }
 0x1e0   :  { %v186_v13 = vpop.f32.mrf.mxu1 }
 0x1e1   :  { %v187_v14 = vadd.f32 %v186_v13, %v145_v4 }
 0x1e3   :  { %v197_v16 = vmax.f32 %v187_v14, 0.0 }
 0x1e5   :  { %v201_v17 = vpack.c.bf16 %v197_v16, %v196_v15 }
 0x1e7   :  { %1478 = vmatmul.msk.bf16.gmra.mxu2 %vm33_vm0, %v201_v17 }
 0x1e8   :  { %v189_v18 = vpop.f32.mrf.mxu1 }
 0x1e9   :  { %v190_v19 = vadd.f32 %v189_v18, %v145_v4 }
 0x1eb   :  { %v198_v22 = vmax.f32 %v190_v19, 0.0 }
 0x1f0   :  { %v191_v20 = vpop.f32.mrf.mxu1 }
 0x1f1   :  { %v192_v21 = vadd.f32 %v191_v20, %v145_v4 }
 0x1f3   :  { %v199_v23 = vmax.f32 %v192_v21, 0.0 }
 0x1f5   :  { %v202_v24 = vpack.c.bf16 %v199_v23, %v198_v22  ;;  %v1750_v22 = vld [vmem:[%s2171_s5 + $0x18] sm:$0xff]  ;;  %v1749_v23 = vld [vmem:[%s2171_s5 + $0x10] sm:$0xff] }
 0x1f6   :  { %459 = vmatpush.bf16.msrb.mxu1 %v1750_v22 }
 0x1f7   :  { %1479 = vmatmul.msk.bf16.gmra.mxu2 %vm33_vm0, %v202_v24  ;;  %v1505_v24 = vld [vmem:[%s2172_s7 + $0x4] sm:$0x7] }
 0x1f8   :  { %v397_v26 = vperm.slane %v1505_v24, 0 }
 0x1fa   :  { %460 = vmatpush.bf16.msrb.mxu1 %v1749_v23 }
 0x25a   :  { %v234_v27 = vpop.f32.mrf.mxu2 }
 0x25b   :  { %v235_v29 = vadd.f32 %v234_v27, %v203_v28 }
 0x25d   :  { %v249_v32 = vmax.f32 %v235_v29, 0.0 }
 0x262   :  { %v236_v30 = vpop.f32.mrf.mxu2 }
 0x263   :  { %v237_v31 = vadd.f32 %v236_v30, %v203_v28 }
 0x265   :  { %v250_v33 = vmax.f32 %v237_v31, 0.0 }
 0x267   :  { %v255_v34 = vpack.c.bf16 %v250_v33, %v249_v32 }
 0x269   :  { %1488 = vmatmul.msk.bf16.vlgmr.msra.gmra.mxu3 %vm33_vm0, %v255_v34 }
 0x26a   :  { %v239_v35 = vpop.f32.mrf.mxu2 }
 0x26b   :  { %v240_v36 = vadd.f32 %v239_v35, %v203_v28 }
 0x26d   :  { %v251_v39 = vmax.f32 %v240_v36, 0.0 }
 0x272   :  { %v241_v37 = vpop.f32.mrf.mxu2 }
 0x273   :  { %v242_v38 = vadd.f32 %v241_v37, %v203_v28 }
 0x275   :  { %v252_v40 = vmax.f32 %v242_v38, 0.0 }
 0x277   :  { %v256_v41 = vpack.c.bf16 %v252_v40, %v251_v39 }
 0x279   :  { %1489 = vmatmul.msk.bf16.gmra.mxu3 %vm33_vm0, %v256_v41 }
 0x27a   :  { %v244_v42 = vpop.f32.mrf.mxu2 }
 0x27b   :  { %v245_v43 = vadd.f32 %v244_v42, %v203_v28 }
 0x27d   :  { %v253_v46 = vmax.f32 %v245_v43, 0.0 }
 0x282   :  { %v246_v44 = vpop.f32.mrf.mxu2 }
 0x283   :  { %v247_v45 = vadd.f32 %v246_v44, %v203_v28 }
 0x285   :  { %v254_v47 = vmax.f32 %v247_v45, 0.0 }
 0x287   :  { %v257_v48 = vpack.c.bf16 %v254_v47, %v253_v46  ;;  %v1752_v47 = vld [vmem:[%s2173_s6 + $0x18] sm:$0xff] }
 0x288   :  { %514 = vmatpush.bf16.msrb.mxu2 %v1752_v47 }
 0x289   :  { %1490 = vmatmul.msk.bf16.gmra.mxu3 %vm33_vm0, %v257_v48  ;;  %v1751_v48 = vld [vmem:[%s2173_s6 + $0x10] sm:$0xff] }
 0x28c   :  { %515 = vmatpush.bf16.msrb.mxu2 %v1751_v48 }
 0x2ec   :  { %v289_v49 = vpop.f32.mrf.mxu3 }
 0x2ed   :  { %v290_v4 = vadd.f32 %v289_v49, %v258_v54 }
 0x2ef   :  { %v304_v7 = vmax.f32 %v290_v4, 0.0 }
 0x2f4   :  { %v291_v50 = vpop.f32.mrf.mxu3 }
 0x2f5   :  { %v292_v1 = vadd.f32 %v291_v50, %v258_v54  ;;  %v431_v50 = vperm.slane %v1505_v24, 1 }
 0x2f7   :  { %v305_v6 = vmax.f32 %v292_v1, 0.0 }
 0x2fc   :  { %v294_v51 = vpop.f32.mrf.mxu3 }
 0x2fd   :  { %v295_v60 = vadd.f32 %v294_v51, %v258_v54 }
 0x2ff   :  { %v306_v5 = vmax.f32 %v295_v60, 0.0 }
 0x304   :  { %v296_v52 = vpop.f32.mrf.mxu3 }
 0x305   :  { %v297_v58 = vadd.f32 %v296_v52, %v258_v54 }
 0x307   :  { %v307_v3 = vmax.f32 %v297_v58, 0.0 }
 0x30c   :  { %v299_v53 = vpop.f32.mrf.mxu3 }
 0x30d   :  { %v300_v56 = vadd.f32 %v299_v53, %v258_v54 }
 0x30f   :  { %v308_v0 = vmax.f32 %v300_v56, 0.0 }
 0x314   :  { %v301_v55 = vpop.f32.mrf.mxu3 }
 0x315   :  { %v302_v57 = vadd.f32 %v301_v55, %v258_v54 }
 0x317   :  { %v309_v59 = vmax.f32 %v302_v57, 0.0 }
 0x319   :  { %327 = vmatpush.msrb.mxu3 %v309_v59 }
 0x31b   :  { %328 = vmatpush.msrb.mxu3 %v308_v0 }
 0x31d   :  { %329 = vmatpush.msrb.mxu3 %v307_v3 }
 0x31f   :  { %330 = vmatpush.msrb.mxu3 %v306_v5 }
 0x321   :  { %331 = vmatpush.msrb.mxu3 %v305_v6 }
 0x323   :  { %332 = vmatpush.msrb.mxu3 %v304_v7 }
 0x324   :  { %1491 = vmatmul.msk.f32.vlgmr.msrb.gmra.mxu3 %vm310_vm5, %v1943_v2 }
 0x32c   :  { %1492 = vmatmul.msk.f32.gmra.mxu3 %vm310_vm5, %v1950_v8 }
 0x3a7   :  { %v334_v11 = vpop.f32.mrf.mxu3 }
 0x3af   :  { %v337_v12 = vpop.f32.mrf.mxu3 }
 0x3b0   :  { %v357_v13 = vpack.c.bf16 %v337_v12, %v334_v11 }
 0x3b2   :  { %1514 = vmatmul.msk.bf16.vlgmr.msrb.gmra.mxu0 %vm33_vm0, %v357_v13 }
 0x42f   :  { %v382_v14 = vpop.f32.mrf.mxu0 }
 0x437   :  { %v384_v15 = vpop.f32.mrf.mxu0 }
 0x438   :  { %v1796_v16 = vpack.i.bf16 %v384_v15, %v382_v14  ;;  %v395_v21 = vpack.c.bf16 %v384_v15, %v382_v14 }
 0x43a   :  { %1797 = vrot.lane.b32.xlu0 %v1796_v16, %s1831_s14 }
 0x4ac   :  { %v1798_v17 = vpop.permute.xlu0 %1797 }
 0x4ad   :  { %v1800_v18 = vunpack.i.h.bf16 %v1798_v17  ;;  %v1799_v19 = vunpack.i.l.bf16 %v1798_v17  ;;  %v486_v17 = vperm.slane %v1505_v24, 2  ;;  %v1754_v24 = vld [vmem:[%s2167_s4 + $0x28] sm:$0xff] }
 0x4af   :  { %v396_v20 = vpack.c.bf16 %v1800_v18, %v1799_v19 }
 0x4b1   :  { %404 = vmatpush.bf16.msra.mxu0 %v396_v20 }
 0x4b5   :  { %405 = vmatpush.bf16.msra.mxu0 %v395_v21 }
 0x4b8   :  { %1515 = vmatmul.msk.bf16.vlgmr.msra.gmra.mxu0 %vm33_vm0, %v1901_v61 }
 0x4c8   :  { %1516 = vmatmul.msk.bf16.gmra.mxu0 %vm33_vm0, %v1908_v62 }
 0x4d8   :  { %1517 = vmatmul.msk.bf16.gmra.mxu0 %vm33_vm0, %v1915_v63 }
 0x535   :  { %v407_v25 = vpop.f32.mrf.mxu0 }
 0x536   :  { %v408_v27 = vadd.f32 %v407_v25, %v397_v26 }
 0x538   :  { %v422_v30 = vmax.f32 %v408_v27, 0.0 }
 0x53d   :  { %v409_v28 = vpop.f32.mrf.mxu0 }
 0x53e   :  { %v410_v29 = vadd.f32 %v409_v28, %v397_v26 }
 0x540   :  { %v423_v31 = vmax.f32 %v410_v29, 0.0 }
 0x542   :  { %v428_v32 = vpack.c.bf16 %v423_v31, %v422_v30 }
 0x544   :  { %1526 = vmatmul.msk.bf16.vlgmr.msrb.gmra.mxu1 %vm33_vm0, %v428_v32  ;;  %v1753_v32 = vld [vmem:[%s2167_s4 + $0x20] sm:$0xff] }
 0x545   :  { %v412_v33 = vpop.f32.mrf.mxu0 }
 0x546   :  { %v413_v34 = vadd.f32 %v412_v33, %v397_v26 }
 0x548   :  { %v424_v37 = vmax.f32 %v413_v34, 0.0 }
 0x54d   :  { %v414_v35 = vpop.f32.mrf.mxu0 }
 0x54e   :  { %v415_v36 = vadd.f32 %v414_v35, %v397_v26 }
 0x550   :  { %v425_v38 = vmax.f32 %v415_v36, 0.0 }
 0x552   :  { %v429_v39 = vpack.c.bf16 %v425_v38, %v424_v37 }
 0x554   :  { %1527 = vmatmul.msk.bf16.gmra.mxu1 %vm33_vm0, %v429_v39 }
 0x555   :  { %v417_v40 = vpop.f32.mrf.mxu0 }
 0x556   :  { %v418_v41 = vadd.f32 %v417_v40, %v397_v26 }
 0x558   :  { %v426_v44 = vmax.f32 %v418_v41, 0.0 }
 0x55d   :  { %v419_v42 = vpop.f32.mrf.mxu0 }
 0x55e   :  { %v420_v43 = vadd.f32 %v419_v42, %v397_v26 }
 0x560   :  { %v427_v45 = vmax.f32 %v420_v43, 0.0 }
 0x562   :  { %v430_v46 = vpack.c.bf16 %v427_v45, %v426_v44  ;;  %v1756_v44 = vld [vmem:[%s2171_s5 + $0x28] sm:$0xff]  ;;  %v1755_v45 = vld [vmem:[%s2171_s5 + $0x20] sm:$0xff] }
 0x563   :  { %680 = vmatpush.bf16.msrb.mxu0 %v1756_v44 }
 0x564   :  { %1528 = vmatmul.msk.bf16.gmra.mxu1 %vm33_vm0, %v430_v46  ;;  %v1554_v46 = vld [vmem:[%s2172_s7 + $0x8] sm:$0x7] }
 0x565   :  { %v618_v48 = vperm.slane %v1554_v46, 0 }
 0x567   :  { %681 = vmatpush.bf16.msrb.mxu0 %v1755_v45 }
 0x5c1   :  { %v462_v49 = vpop.f32.mrf.mxu1 }
 0x5c2   :  { %v463_v51 = vadd.f32 %v462_v49, %v431_v50 }
 0x5c4   :  { %v477_v54 = vmax.f32 %v463_v51, 0.0 }
 0x5c9   :  { %v464_v52 = vpop.f32.mrf.mxu1 }
 0x5ca   :  { %v465_v53 = vadd.f32 %v464_v52, %v431_v50 }
 0x5cc   :  { %v478_v55 = vmax.f32 %v465_v53, 0.0 }
 0x5ce   :  { %v483_v56 = vpack.c.bf16 %v478_v55, %v477_v54 }
 0x5d0   :  { %1537 = vmatmul.msk.bf16.vlgmr.msrb.gmra.mxu2 %vm33_vm0, %v483_v56 }
 0x5d1   :  { %v467_v57 = vpop.f32.mrf.mxu1 }
 0x5d2   :  { %v468_v58 = vadd.f32 %v467_v57, %v431_v50 }
 0x5d4   :  { %v479_v0 = vmax.f32 %v468_v58, 0.0 }
 0x5d9   :  { %v469_v59 = vpop.f32.mrf.mxu1 }
 0x5da   :  { %v470_v60 = vadd.f32 %v469_v59, %v431_v50 }
 0x5dc   :  { %v480_v1 = vmax.f32 %v470_v60, 0.0 }
 0x5de   :  { %v484_v3 = vpack.c.bf16 %v480_v1, %v479_v0 }
 0x5e0   :  { %1538 = vmatmul.msk.bf16.gmra.mxu2 %vm33_vm0, %v484_v3 }
 0x5e1   :  { %v472_v4 = vpop.f32.mrf.mxu1 }
 0x5e2   :  { %v473_v5 = vadd.f32 %v472_v4, %v431_v50 }
 0x5e4   :  { %v481_v9 = vmax.f32 %v473_v5, 0.0 }
 0x5e9   :  { %v474_v6 = vpop.f32.mrf.mxu1 }
 0x5ea   :  { %v475_v7 = vadd.f32 %v474_v6, %v431_v50 }
 0x5ec   :  { %v482_v10 = vmax.f32 %v475_v7, 0.0 }
 0x5ee   :  { %v485_v11 = vpack.c.bf16 %v482_v10, %v481_v9  ;;  %v1758_v10 = vld [vmem:[%s2173_s6 + $0x28] sm:$0xff] }
 0x5ef   :  { %735 = vmatpush.bf16.msra.mxu1 %v1758_v10 }
 0x5f0   :  { %1539 = vmatmul.msk.bf16.gmra.mxu2 %vm33_vm0, %v485_v11  ;;  %v1757_v11 = vld [vmem:[%s2173_s6 + $0x20] sm:$0xff] }
 0x5f3   :  { %736 = vmatpush.bf16.msra.mxu1 %v1757_v11 }
 0x653   :  { %v517_v12 = vpop.f32.mrf.mxu2 }
 0x654   :  { %v518_v28 = vadd.f32 %v517_v12, %v486_v17 }
 0x656   :  { %v532_v31 = vmax.f32 %v518_v28, 0.0 }
 0x65b   :  { %v519_v13 = vpop.f32.mrf.mxu2 }
 0x65c   :  { %v520_v26 = vadd.f32 %v519_v13, %v486_v17  ;;  %v652_v13 = vperm.slane %v1554_v46, 1 }
 0x65e   :  { %v533_v30 = vmax.f32 %v520_v26, 0.0 }
 0x663   :  { %v522_v14 = vpop.f32.mrf.mxu2 }
 0x664   :  { %v523_v23 = vadd.f32 %v522_v14, %v486_v17 }
 0x666   :  { %v534_v29 = vmax.f32 %v523_v23, 0.0 }
 0x66b   :  { %v524_v15 = vpop.f32.mrf.mxu2 }
 0x66c   :  { %v525_v21 = vadd.f32 %v524_v15, %v486_v17 }
 0x66e   :  { %v535_v27 = vmax.f32 %v525_v21, 0.0 }
 0x673   :  { %v527_v16 = vpop.f32.mrf.mxu2 }
 0x674   :  { %v528_v19 = vadd.f32 %v527_v16, %v486_v17 }
 0x676   :  { %v536_v25 = vmax.f32 %v528_v19, 0.0 }
 0x67b   :  { %v529_v18 = vpop.f32.mrf.mxu2 }
 0x67c   :  { %v530_v20 = vadd.f32 %v529_v18, %v486_v17 }
 0x67e   :  { %v537_v22 = vmax.f32 %v530_v20, 0.0 }
 0x680   :  { %548 = vmatpush.msra.mxu3 %v537_v22 }
 0x682   :  { %549 = vmatpush.msra.mxu3 %v536_v25 }
 0x684   :  { %550 = vmatpush.msra.mxu3 %v535_v27 }
 0x686   :  { %551 = vmatpush.msra.mxu3 %v534_v29 }
 0x688   :  { %552 = vmatpush.msra.mxu3 %v533_v30 }
 0x68a   :  { %553 = vmatpush.msra.mxu3 %v532_v31 }
 0x68b   :  { %1540 = vmatmul.msk.f32.vlgmr.msra.gmra.mxu3 %vm310_vm5, %v1943_v2 }
 0x68c   :  { %600 = vmatpush.bf16.msrb.mxu3 %v1754_v24 }
 0x690   :  { %601 = vmatpush.bf16.msrb.mxu3 %v1753_v32 }
 0x693   :  { %1541 = vmatmul.msk.f32.gmra.mxu3 %vm310_vm5, %v1950_v8 }
 0x70e   :  { %v555_v33 = vpop.f32.mrf.mxu3 }
 0x716   :  { %v558_v34 = vpop.f32.mrf.mxu3 }
 0x717   :  { %v578_v35 = vpack.c.bf16 %v558_v34, %v555_v33 }
 0x719   :  { %1563 = vmatmul.msk.bf16.vlgmr.msrb.gmra.mxu3 %vm33_vm0, %v578_v35 }
 0x79c   :  { %v603_v36 = vpop.f32.mrf.mxu3 }
 0x7a4   :  { %v605_v37 = vpop.f32.mrf.mxu3 }
 0x7a5   :  { %v1801_v38 = vpack.i.bf16 %v605_v37, %v603_v36  ;;  %v616_v43 = vpack.c.bf16 %v605_v37, %v603_v36 }
 0x7a7   :  { %1802 = vrot.lane.b32.xlu1 %v1801_v38, %s1831_s14 }
 0x819   :  { %v1803_v39 = vpop.permute.xlu1 %1802 }
 0x81a   :  { %v1805_v40 = vunpack.i.h.bf16 %v1803_v39  ;;  %v1804_v41 = vunpack.i.l.bf16 %v1803_v39  ;;  %v707_v39 = vperm.slane %v1554_v46, 2 }
 0x81c   :  { %v617_v42 = vpack.c.bf16 %v1805_v40, %v1804_v41 }
 0x81e   :  { %625 = vmatpush.bf16.msra.mxu3 %v617_v42 }
 0x822   :  { %626 = vmatpush.bf16.msra.mxu3 %v616_v43 }
 0x825   :  { %1564 = vmatmul.msk.bf16.vlgmr.msra.gmra.mxu3 %vm33_vm0, %v1901_v61 }
 0x835   :  { %1565 = vmatmul.msk.bf16.gmra.mxu3 %vm33_vm0, %v1908_v62 }
 0x845   :  { %1566 = vmatmul.msk.bf16.gmra.mxu3 %vm33_vm0, %v1915_v63 }
 0x8a8   :  { %v628_v47 = vpop.f32.mrf.mxu3 }
 0x8a9   :  { %v629_v49 = vadd.f32 %v628_v47, %v618_v48 }
 0x8ab   :  { %v643_v52 = vmax.f32 %v629_v49, 0.0 }
 0x8b0   :  { %v630_v50 = vpop.f32.mrf.mxu3 }
 0x8b1   :  { %v631_v51 = vadd.f32 %v630_v50, %v618_v48 }
 0x8b3   :  { %v644_v53 = vmax.f32 %v631_v51, 0.0 }
 0x8b5   :  { %v649_v54 = vpack.c.bf16 %v644_v53, %v643_v52  ;;  %v1760_v53 = vld [vmem:[%s2167_s4 + $0x38] sm:$0xff] }
 0x8b7   :  { %1575 = vmatmul.msk.bf16.vlgmr.msrb.gmra.mxu0 %vm33_vm0, %v649_v54  ;;  %v1759_v54 = vld [vmem:[%s2167_s4 + $0x30] sm:$0xff] }
 0x8b8   :  { %v633_v55 = vpop.f32.mrf.mxu3 }
 0x8b9   :  { %v634_v56 = vadd.f32 %v633_v55, %v618_v48 }
 0x8bb   :  { %v645_v59 = vmax.f32 %v634_v56, 0.0 }
 0x8c0   :  { %v635_v57 = vpop.f32.mrf.mxu3 }
 0x8c1   :  { %v636_v58 = vadd.f32 %v635_v57, %v618_v48 }
 0x8c3   :  { %v646_v60 = vmax.f32 %v636_v58, 0.0 }
 0x8c5   :  { %v650_v0 = vpack.c.bf16 %v646_v60, %v645_v59 }
 0x8c7   :  { %1576 = vmatmul.msk.bf16.gmra.mxu0 %vm33_vm0, %v650_v0 }
 0x8c8   :  { %v638_v1 = vpop.f32.mrf.mxu3 }
 0x8c9   :  { %v639_v3 = vadd.f32 %v638_v1, %v618_v48 }
 0x8cb   :  { %v647_v6 = vmax.f32 %v639_v3, 0.0 }
 0x8d0   :  { %v640_v4 = vpop.f32.mrf.mxu3 }
 0x8d1   :  { %v641_v5 = vadd.f32 %v640_v4, %v618_v48 }
 0x8d3   :  { %v648_v7 = vmax.f32 %v641_v5, 0.0 }
 0x8d5   :  { %v651_v9 = vpack.c.bf16 %v648_v7, %v647_v6  ;;  %v1762_v6 = vld [vmem:[%s2171_s5 + $0x38] sm:$0xff]  ;;  %v1761_v7 = vld [vmem:[%s2171_s5 + $0x30] sm:$0xff] }
 0x8d7   :  { %1577 = vmatmul.msk.bf16.gmra.mxu0 %vm33_vm0, %v651_v9  ;;  %v1603_v9 = vld [vmem:[%s2172_s7 + $0xc] sm:$0x7] }
 0x8d8   :  { %v839_v11 = vperm.slane %v1603_v9, 0 }
 0x934   :  { %v683_v12 = vpop.f32.mrf.mxu0 }
 0x935   :  { %v684_v14 = vadd.f32 %v683_v12, %v652_v13 }
 0x937   :  { %v698_v17 = vmax.f32 %v684_v14, 0.0 }
 0x93c   :  { %v685_v15 = vpop.f32.mrf.mxu0 }
 0x93d   :  { %v686_v16 = vadd.f32 %v685_v15, %v652_v13 }
 0x93f   :  { %v699_v18 = vmax.f32 %v686_v16, 0.0 }
 0x941   :  { %v704_v19 = vpack.c.bf16 %v699_v18, %v698_v17 }
 0x943   :  { %1586 = vmatmul.msk.bf16.vlgmr.msra.gmra.mxu1 %vm33_vm0, %v704_v19 }
 0x944   :  { %v688_v20 = vpop.f32.mrf.mxu0 }
 0x945   :  { %v689_v21 = vadd.f32 %v688_v20, %v652_v13 }
 0x947   :  { %v700_v25 = vmax.f32 %v689_v21, 0.0 }
 0x94c   :  { %v690_v22 = vpop.f32.mrf.mxu0 }
 0x94d   :  { %v691_v23 = vadd.f32 %v690_v22, %v652_v13 }
 0x94f   :  { %v701_v26 = vmax.f32 %v691_v23, 0.0 }
 0x951   :  { %v705_v27 = vpack.c.bf16 %v701_v26, %v700_v25 }
 0x953   :  { %1587 = vmatmul.msk.bf16.gmra.mxu1 %vm33_vm0, %v705_v27 }
 0x954   :  { %v693_v28 = vpop.f32.mrf.mxu0 }
 0x955   :  { %v694_v29 = vadd.f32 %v693_v28, %v652_v13 }
 0x957   :  { %v702_v24 = vmax.f32 %v694_v29, 0.0 }
 0x95c   :  { %v695_v30 = vpop.f32.mrf.mxu0 }
 0x95d   :  { %v696_v31 = vadd.f32 %v695_v30, %v652_v13 }
 0x95f   :  { %v703_v32 = vmax.f32 %v696_v31, 0.0 }
 0x961   :  { %v706_v33 = vpack.c.bf16 %v703_v32, %v702_v24  ;;  %v1764_v32 = vld [vmem:[%s2173_s6 + $0x38] sm:$0xff] }
 0x962   :  { %956 = vmatpush.bf16.msra.mxu0 %v1764_v32 }
 0x963   :  { %1588 = vmatmul.msk.bf16.gmra.mxu1 %vm33_vm0, %v706_v33  ;;  %v1763_v33 = vld [vmem:[%s2173_s6 + $0x30] sm:$0xff] }
 0x966   :  { %957 = vmatpush.bf16.msra.mxu0 %v1763_v33 }
 0x9c0   :  { %v738_v34 = vpop.f32.mrf.mxu1 }
 0x9c1   :  { %v739_v50 = vadd.f32 %v738_v34, %v707_v39 }
 0x9c3   :  { %v753_v46 = vmax.f32 %v739_v50, 0.0 }
 0x9c8   :  { %v740_v35 = vpop.f32.mrf.mxu1 }
 0x9c9   :  { %v741_v48 = vadd.f32 %v740_v35, %v707_v39  ;;  %v873_v35 = vperm.slane %v1603_v9, 1 }
 0x9cb   :  { %v754_v52 = vmax.f32 %v741_v48, 0.0 }
 0x9d0   :  { %v743_v36 = vpop.f32.mrf.mxu1 }
 0x9d1   :  { %v744_v45 = vadd.f32 %v743_v36, %v707_v39 }
 0x9d3   :  { %v755_v51 = vmax.f32 %v744_v45, 0.0 }
 0x9d8   :  { %v745_v37 = vpop.f32.mrf.mxu1 }
 0x9d9   :  { %v746_v43 = vadd.f32 %v745_v37, %v707_v39 }
 0x9db   :  { %v756_v49 = vmax.f32 %v746_v43, 0.0 }
 0x9e0   :  { %v748_v38 = vpop.f32.mrf.mxu1 }
 0x9e1   :  { %v749_v41 = vadd.f32 %v748_v38, %v707_v39 }
 0x9e3   :  { %v757_v47 = vmax.f32 %v749_v41, 0.0 }
 0x9e8   :  { %v750_v40 = vpop.f32.mrf.mxu1 }
 0x9e9   :  { %v751_v42 = vadd.f32 %v750_v40, %v707_v39 }
 0x9eb   :  { %v758_v44 = vmax.f32 %v751_v42, 0.0 }
 0x9ed   :  { %769 = vmatpush.msra.mxu2 %v758_v44  ;;  %1777 = vmatpush.msrb.mxu3 %v758_v44 }
 0x9ef   :  { %770 = vmatpush.msra.mxu2 %v757_v47  ;;  %1778 = vmatpush.msrb.mxu3 %v757_v47 }
 0x9f1   :  { %771 = vmatpush.msra.mxu2 %v756_v49  ;;  %1779 = vmatpush.msrb.mxu3 %v756_v49 }
 0x9f3   :  { %772 = vmatpush.msra.mxu2 %v755_v51  ;;  %1780 = vmatpush.msrb.mxu3 %v755_v51 }
 0x9f5   :  { %773 = vmatpush.msra.mxu2 %v754_v52  ;;  %1781 = vmatpush.msrb.mxu3 %v754_v52 }
 0x9f7   :  { %774 = vmatpush.msra.mxu2 %v753_v46  ;;  %1782 = vmatpush.msrb.mxu3 %v753_v46 }
 0x9f8   :  { %1589 = vmatmul.msk.f32.vlgmr.msra.gmra.mxu2 %vm310_vm5, %v1943_v2  ;;  %1590 = vmatmul.msk.f32.vlgmr.msrb.gmra.mxu3 %vm310_vm5, %v1950_v8 }
 0x9f9   :  { %821 = vmatpush.bf16.msrb.mxu2 %v1760_v53  ;;  %901 = vmatpush.bf16.msra.mxu3 %v1762_v6 }
 0x9fd   :  { %822 = vmatpush.bf16.msrb.mxu2 %v1759_v54  ;;  %902 = vmatpush.bf16.msra.mxu3 %v1761_v7 }
 0xa7b   :  { %v776_v55 = vpop.f32.mrf.mxu2  ;;  %v779_v56 = vpop.f32.mrf.mxu3 }
 0xa7c   :  { %v799_v57 = vpack.c.bf16 %v779_v56, %v776_v55 }
 0xa7e   :  { %1612 = vmatmul.msk.bf16.vlgmr.msrb.gmra.mxu2 %vm33_vm0, %v799_v57 }
 0xb01   :  { %v824_v58 = vpop.f32.mrf.mxu2 }
 0xb09   :  { %v826_v59 = vpop.f32.mrf.mxu2 }
 0xb0a   :  { %v1806_v60 = vpack.i.bf16 %v826_v59, %v824_v58  ;;  %v837_v5 = vpack.c.bf16 %v826_v59, %v824_v58 }
 0xb0c   :  { %1807 = vrot.lane.b32.xlu1 %v1806_v60, %s1831_s14 }
 0xb7e   :  { %v1808_v0 = vpop.permute.xlu1 %1807 }
 0xb7f   :  { %v1810_v1 = vunpack.i.h.bf16 %v1808_v0  ;;  %v1809_v3 = vunpack.i.l.bf16 %v1808_v0  ;;  %v928_v0 = vperm.slane %v1603_v9, 2 }
 0xb81   :  { %v838_v4 = vpack.c.bf16 %v1810_v1, %v1809_v3 }
 0xb83   :  { %846 = vmatpush.bf16.msra.mxu2 %v838_v4 }
 0xb87   :  { %847 = vmatpush.bf16.msra.mxu2 %v837_v5 }
 0xb8a   :  { %1613 = vmatmul.msk.bf16.vlgmr.msra.gmra.mxu2 %vm33_vm0, %v1901_v61 }
 0xb9a   :  { %1614 = vmatmul.msk.bf16.gmra.mxu2 %vm33_vm0, %v1908_v62 }
 0xbaa   :  { %1615 = vmatmul.msk.bf16.gmra.mxu2 %vm33_vm0, %v1915_v63 }
 0xc0d   :  { %v849_v10 = vpop.f32.mrf.mxu2 }
 0xc0e   :  { %v850_v12 = vadd.f32 %v849_v10, %v839_v11 }
 0xc10   :  { %v864_v15 = vmax.f32 %v850_v12, 0.0 }
 0xc15   :  { %v851_v13 = vpop.f32.mrf.mxu2 }
 0xc16   :  { %v852_v14 = vadd.f32 %v851_v13, %v839_v11 }
 0xc18   :  { %v865_v16 = vmax.f32 %v852_v14, 0.0 }
 0xc1a   :  { %v870_v17 = vpack.c.bf16 %v865_v16, %v864_v15  ;;  %v1766_v16 = vld [vmem:[%s2167_s4 + $0x48] sm:$0xff] }
 0xc1c   :  { %1624 = vmatmul.msk.bf16.vlgmr.msra.gmra.mxu3 %vm33_vm0, %v870_v17  ;;  %v1765_v17 = vld [vmem:[%s2167_s4 + $0x40] sm:$0xff] }
 0xc1d   :  { %v854_v18 = vpop.f32.mrf.mxu2 }
 0xc1e   :  { %v855_v19 = vadd.f32 %v854_v18, %v839_v11 }
 0xc20   :  { %v866_v22 = vmax.f32 %v855_v19, 0.0 }
 0xc25   :  { %v856_v20 = vpop.f32.mrf.mxu2 }
 0xc26   :  { %v857_v21 = vadd.f32 %v856_v20, %v839_v11 }
 0xc28   :  { %v867_v23 = vmax.f32 %v857_v21, 0.0 }
 0xc2a   :  { %v871_v25 = vpack.c.bf16 %v867_v23, %v866_v22 }
 0xc2c   :  { %1625 = vmatmul.msk.bf16.gmra.mxu3 %vm33_vm0, %v871_v25 }
 0xc2d   :  { %v859_v26 = vpop.f32.mrf.mxu2 }
 0xc2e   :  { %v860_v27 = vadd.f32 %v859_v26, %v839_v11 }
 0xc30   :  { %v868_v30 = vmax.f32 %v860_v27, 0.0 }
 0xc35   :  { %v861_v28 = vpop.f32.mrf.mxu2 }
 0xc36   :  { %v862_v29 = vadd.f32 %v861_v28, %v839_v11 }
 0xc38   :  { %v869_v31 = vmax.f32 %v862_v29, 0.0 }
 0xc3a   :  { %v872_v24 = vpack.c.bf16 %v869_v31, %v868_v30  ;;  %v1768_v30 = vld [vmem:[%s2171_s5 + $0x48] sm:$0xff]  ;;  %v1767_v31 = vld [vmem:[%s2171_s5 + $0x40] sm:$0xff] }
 0xc3b   :  { %1122 = vmatpush.bf16.msrb.mxu2 %v1768_v30 }
 0xc3c   :  { %1626 = vmatmul.msk.bf16.gmra.mxu3 %vm33_vm0, %v872_v24 }
 0xc3f   :  { %1123 = vmatpush.bf16.msrb.mxu2 %v1767_v31 }
 0xc9f   :  { %v904_v34 = vpop.f32.mrf.mxu3 }
 0xca0   :  { %v905_v36 = vadd.f32 %v904_v34, %v873_v35 }
 0xca2   :  { %v919_v39 = vmax.f32 %v905_v36, 0.0 }
 0xca7   :  { %v906_v37 = vpop.f32.mrf.mxu3 }
 0xca8   :  { %v907_v38 = vadd.f32 %v906_v37, %v873_v35 }
 0xcaa   :  { %v920_v40 = vmax.f32 %v907_v38, 0.0 }
 0xcac   :  { %v925_v41 = vpack.c.bf16 %v920_v40, %v919_v39 }
 0xcae   :  { %1635 = vmatmul.msk.bf16.vlgmr.msra.gmra.mxu0 %vm33_vm0, %v925_v41 }
 0xcaf   :  { %v909_v42 = vpop.f32.mrf.mxu3 }
 0xcb0   :  { %v910_v43 = vadd.f32 %v909_v42, %v873_v35 }
 0xcb2   :  { %v921_v47 = vmax.f32 %v910_v43, 0.0 }
 0xcb7   :  { %v911_v44 = vpop.f32.mrf.mxu3 }
 0xcb8   :  { %v912_v45 = vadd.f32 %v911_v44, %v873_v35 }
 0xcba   :  { %v922_v48 = vmax.f32 %v912_v45, 0.0 }
 0xcbc   :  { %v926_v49 = vpack.c.bf16 %v922_v48, %v921_v47 }
 0xcbe   :  { %1636 = vmatmul.msk.bf16.gmra.mxu0 %vm33_vm0, %v926_v49 }
 0xcbf   :  { %v914_v50 = vpop.f32.mrf.mxu3 }
 0xcc0   :  { %v915_v51 = vadd.f32 %v914_v50, %v873_v35 }
 0xcc2   :  { %v923_v53 = vmax.f32 %v915_v51, 0.0 }
 0xcc7   :  { %v916_v52 = vpop.f32.mrf.mxu3 }
 0xcc8   :  { %v917_v46 = vadd.f32 %v916_v52, %v873_v35  ;;  %v1770_v52 = vld [vmem:[%s2173_s6 + $0x48] sm:$0xff] }
 0xcc9   :  { %1177 = vmatpush.bf16.msrb.mxu3 %v1770_v52 }
 0xcca   :  { %v924_v54 = vmax.f32 %v917_v46, 0.0  ;;  %v1769_v46 = vld [vmem:[%s2173_s6 + $0x40] sm:$0xff] }
 0xccc   :  { %v927_v55 = vpack.c.bf16 %v924_v54, %v923_v53 }
 0xccd   :  { %1178 = vmatpush.bf16.msrb.mxu3 %v1769_v46 }
 0xcce   :  { %1637 = vmatmul.msk.bf16.gmra.mxu0 %vm33_vm0, %v927_v55 }
 0xd2b   :  { %v959_v56 = vpop.f32.mrf.mxu0 }
 0xd2c   :  { %v960_v13 = vadd.f32 %v959_v56, %v928_v0 }
 0xd2e   :  { %v974_v9 = vmax.f32 %v960_v13, 0.0 }
 0xd33   :  { %v961_v57 = vpop.f32.mrf.mxu0 }
 0xd34   :  { %v962_v11 = vadd.f32 %v961_v57, %v928_v0 }
 0xd36   :  { %v975_v15 = vmax.f32 %v962_v11, 0.0 }
 0xd3b   :  { %v964_v58 = vpop.f32.mrf.mxu0 }
 0xd3c   :  { %v965_v7 = vadd.f32 %v964_v58, %v928_v0 }
 0xd3e   :  { %v976_v14 = vmax.f32 %v965_v7, 0.0 }
 0xd43   :  { %v966_v59 = vpop.f32.mrf.mxu0 }
 0xd44   :  { %v967_v5 = vadd.f32 %v966_v59, %v928_v0 }
 0xd46   :  { %v977_v12 = vmax.f32 %v967_v5, 0.0 }
 0xd4b   :  { %v969_v60 = vpop.f32.mrf.mxu0 }
 0xd4c   :  { %v970_v3 = vadd.f32 %v969_v60, %v928_v0 }
 0xd4e   :  { %v978_v10 = vmax.f32 %v970_v3, 0.0 }
 0xd53   :  { %v971_v1 = vpop.f32.mrf.mxu0 }
 0xd54   :  { %v972_v4 = vadd.f32 %v971_v1, %v928_v0 }
 0xd56   :  { %v979_v6 = vmax.f32 %v972_v4, 0.0 }
 0xd58   :  { %990 = vmatpush.msrb.mxu0 %v979_v6  ;;  %1783 = vmatpush.msrb.mxu1 %v979_v6 }
 0xd5a   :  { %991 = vmatpush.msrb.mxu0 %v978_v10  ;;  %1784 = vmatpush.msrb.mxu1 %v978_v10 }
 0xd5c   :  { %992 = vmatpush.msrb.mxu0 %v977_v12  ;;  %1785 = vmatpush.msrb.mxu1 %v977_v12 }
 0xd5e   :  { %993 = vmatpush.msrb.mxu0 %v976_v14  ;;  %1786 = vmatpush.msrb.mxu1 %v976_v14 }
 0xd60   :  { %994 = vmatpush.msrb.mxu0 %v975_v15  ;;  %1787 = vmatpush.msrb.mxu1 %v975_v15 }
 0xd62   :  { %995 = vmatpush.msrb.mxu0 %v974_v9  ;;  %1788 = vmatpush.msrb.mxu1 %v974_v9 }
 0xd63   :  { %1638 = vmatmul.msk.f32.vlgmr.msrb.gmra.mxu0 %vm310_vm5, %v1943_v2  ;;  %1639 = vmatmul.msk.f32.vlgmr.msrb.gmra.mxu1 %vm310_vm5, %v1950_v8 }
 0xd64   :  { %1042 = vmatpush.bf16.msra.mxu1 %v1766_v16 }
 0xd68   :  { %1043 = vmatpush.bf16.msra.mxu1 %v1765_v17 }
 0xde0   :  { %v997_v18 = vpop.f32.mrf.mxu0  ;;  %v1000_v19 = vpop.f32.mrf.mxu1 }
 0xde1   :  { %v1020_v20 = vpack.c.bf16 %v1000_v19, %v997_v18 }
 0xde3   :  { %1661 = vmatmul.msk.bf16.vlgmr.msra.gmra.mxu1 %vm33_vm0, %v1020_v20 }
 0xe60   :  { %v1045_v21 = vpop.f32.mrf.mxu1 }
 0xe68   :  { %v1047_v22 = vpop.f32.mrf.mxu1 }
 0xe69   :  { %v1811_v23 = vpack.i.bf16 %v1047_v22, %v1045_v21  ;;  %v1058_v29 = vpack.c.bf16 %v1047_v22, %v1045_v21 }
 0xe6b   :  { %1812 = vrot.lane.b32.xlu2 %v1811_v23, %s1831_s14 }
 0xec5   :  { %v1813_v25 = vpop.permute.xlu2 %1812 }
 0xec6   :  { %v1815_v26 = vunpack.i.h.bf16 %v1813_v25  ;;  %v1814_v27 = vunpack.i.l.bf16 %v1813_v25 }
 0xec8   :  { %v1059_v28 = vpack.c.bf16 %v1815_v26, %v1814_v27 }
 0xeca   :  { %1067 = vmatpush.bf16.msrb.mxu1 %v1059_v28 }
 0xece   :  { %1068 = vmatpush.bf16.msrb.mxu1 %v1058_v29 }
 0xed1   :  { %1662 = vmatmul.msk.bf16.vlgmr.msrb.gmra.mxu1 %vm33_vm0, %v1901_v61  ;;  %v1652_v61 = vld [vmem:[%s2172_s7 + $0x10] sm:$0x7] }
 0xed2   :  { %v1060_v32 = vperm.slane %v1652_v61, 0  ;;  %v1094_v54 = vperm.slane %v1652_v61, 1  ;;  %v1149_v21 = vperm.slane %v1652_v61, 2  ;;  %v1772_v61 = vld [vmem:[%s2167_s4 + $0x58] sm:$0xff] }
 0xee1   :  { %1663 = vmatmul.msk.bf16.gmra.mxu1 %vm33_vm0, %v1908_v62 }
 0xef1   :  { %1664 = vmatmul.msk.bf16.gmra.mxu1 %vm33_vm0, %v1915_v63 }
 0xf4e   :  { %v1070_v24 = vpop.f32.mrf.mxu1 }
 0xf4f   :  { %v1071_v62 = vadd.f32 %v1070_v24, %v1060_v32 }
 0xf51   :  { %v1085_v63 = vmax.f32 %v1071_v62, 0.0 }
 0xf56   :  { %v1072_v33 = vpop.f32.mrf.mxu1 }
 0xf57   :  { %v1073_v34 = vadd.f32 %v1072_v33, %v1060_v32 }
 0xf59   :  { %v1086_v35 = vmax.f32 %v1073_v34, 0.0  ;;  %v1771_v34 = vld [vmem:[%s2167_s4 + $0x50] sm:$0xff] }
 0xf5b   :  { %v1091_v36 = vpack.c.bf16 %v1086_v35, %v1085_v63 }
 0xf5d   :  { %1673 = vmatmul.msk.bf16.vlgmr.msrb.gmra.mxu2 %vm33_vm0, %v1091_v36 }
 0xf5e   :  { %v1075_v37 = vpop.f32.mrf.mxu1 }
 0xf5f   :  { %v1076_v38 = vadd.f32 %v1075_v37, %v1060_v32 }
 0xf61   :  { %v1087_v41 = vmax.f32 %v1076_v38, 0.0 }
 0xf66   :  { %v1077_v39 = vpop.f32.mrf.mxu1 }
 0xf67   :  { %v1078_v40 = vadd.f32 %v1077_v39, %v1060_v32 }
 0xf69   :  { %v1088_v42 = vmax.f32 %v1078_v40, 0.0 }
 0xf6b   :  { %v1092_v43 = vpack.c.bf16 %v1088_v42, %v1087_v41 }
 0xf6d   :  { %1674 = vmatmul.msk.bf16.gmra.mxu2 %vm33_vm0, %v1092_v43  ;;  %v1825_v43 = vld [vmem:[%s2170_s1] sm:$0xff] }
 0xf6e   :  { %v1080_v44 = vpop.f32.mrf.mxu1 }
 0xf6f   :  { %v1081_v45 = vadd.f32 %v1080_v44, %v1060_v32  ;;  %v1826_v44 = vld [vmem:[%s2170_s1 + $0x8] sm:$0xff] }
 0xf71   :  { %v1089_v49 = vmax.f32 %v1081_v45, 0.0  ;;  %v1827_v45 = vld [vmem:[%s2170_s1 + $0x10] sm:$0xff] }
 0xf76   :  { %v1082_v47 = vpop.f32.mrf.mxu1 }
 0xf77   :  { %v1083_v48 = vadd.f32 %v1082_v47, %v1060_v32  ;;  %v1774_v47 = vld [vmem:[%s2171_s5 + $0x58] sm:$0xff] }
 0xf78   :  { %1343 = vmatpush.bf16.msra.mxu1 %v1774_v47 }
 0xf79   :  { %v1090_v50 = vmax.f32 %v1083_v48, 0.0  ;;  %v1773_v48 = vld [vmem:[%s2171_s5 + $0x50] sm:$0xff] }
 0xf7b   :  { %v1093_v51 = vpack.c.bf16 %v1090_v50, %v1089_v49  ;;  %v1701_v49 = vld [vmem:[%s2172_s7 + $0x14] sm:$0x7] }
 0xf7c   :  { %1344 = vmatpush.bf16.msra.mxu1 %v1773_v48 }
 0xf7d   :  { %1675 = vmatmul.msk.bf16.gmra.mxu2 %vm33_vm0, %v1093_v51  ;;  %v1281_v51 = vperm.slane %v1701_v49, 0 }
 0xfe0   :  { %v1125_v53 = vpop.f32.mrf.mxu2 }
 0xfe1   :  { %v1126_v55 = vadd.f32 %v1125_v53, %v1094_v54 }
 0xfe3   :  { %v1140_v58 = vmax.f32 %v1126_v55, 0.0 }
 0xfe8   :  { %v1127_v56 = vpop.f32.mrf.mxu2 }
 0xfe9   :  { %v1128_v57 = vadd.f32 %v1127_v56, %v1094_v54 }
 0xfeb   :  { %v1141_v59 = vmax.f32 %v1128_v57, 0.0 }
 0xfed   :  { %v1146_v60 = vpack.c.bf16 %v1141_v59, %v1140_v58 }
 0xfef   :  { %1684 = vmatmul.msk.bf16.vlgmr.msrb.gmra.mxu3 %vm33_vm0, %v1146_v60 }
 0xff0   :  { %v1130_v0 = vpop.f32.mrf.mxu2 }
 0xff1   :  { %v1131_v1 = vadd.f32 %v1130_v0, %v1094_v54 }
 0xff3   :  { %v1142_v5 = vmax.f32 %v1131_v1, 0.0 }
 0xff8   :  { %v1132_v3 = vpop.f32.mrf.mxu2 }
 0xff9   :  { %v1133_v4 = vadd.f32 %v1132_v3, %v1094_v54 }
 0xffb   :  { %v1143_v6 = vmax.f32 %v1133_v4, 0.0 }
 0xffd   :  { %v1147_v7 = vpack.c.bf16 %v1143_v6, %v1142_v5 }
 0xfff   :  { %1685 = vmatmul.msk.bf16.gmra.mxu3 %vm33_vm0, %v1147_v7 }
0x1000   :  { %v1135_v10 = vpop.f32.mrf.mxu2 }
0x1001   :  { %v1136_v11 = vadd.f32 %v1135_v10, %v1094_v54 }
0x1003   :  { %v1144_v14 = vmax.f32 %v1136_v11, 0.0 }
0x1008   :  { %v1137_v12 = vpop.f32.mrf.mxu2 }
0x1009   :  { %v1138_v13 = vadd.f32 %v1137_v12, %v1094_v54 }
0x100b   :  { %v1145_v15 = vmax.f32 %v1138_v13, 0.0  ;;  %v1776_v13 = vld [vmem:[%s2173_s6 + $0x58] sm:$0xff] }
0x100c   :  { %1398 = vmatpush.bf16.msra.mxu2 %v1776_v13 }
0x100d   :  { %v1148_v9 = vpack.c.bf16 %v1145_v15, %v1144_v14  ;;  %v1775_v14 = vld [vmem:[%s2173_s6 + $0x50] sm:$0xff] }
0x100f   :  { %1686 = vmatmul.msk.bf16.gmra.mxu3 %vm33_vm0, %v1148_v9  ;;  %v1315_v9 = vperm.slane %v1701_v49, 1 }
0x1010   :  { %1399 = vmatpush.bf16.msra.mxu2 %v1775_v14 }
0x1072   :  { %v1180_v16 = vpop.f32.mrf.mxu3 }
0x1073   :  { %v1181_v24 = vadd.f32 %v1180_v16, %v1149_v21 }
0x1075   :  { %v1195_v33 = vmax.f32 %v1181_v24, 0.0 }
0x107a   :  { %v1182_v17 = vpop.f32.mrf.mxu3 }
0x107b   :  { %v1183_v30 = vadd.f32 %v1182_v17, %v1149_v21 }
0x107d   :  { %v1196_v62 = vmax.f32 %v1183_v30, 0.0 }
0x1082   :  { %v1185_v18 = vpop.f32.mrf.mxu3 }
0x1083   :  { %v1186_v28 = vadd.f32 %v1185_v18, %v1149_v21 }
0x1085   :  { %v1197_v32 = vmax.f32 %v1186_v28, 0.0 }
0x108a   :  { %v1187_v19 = vpop.f32.mrf.mxu3 }
0x108b   :  { %v1188_v26 = vadd.f32 %v1187_v19, %v1149_v21 }
0x108d   :  { %v1198_v31 = vmax.f32 %v1188_v26, 0.0 }
0x1092   :  { %v1190_v20 = vpop.f32.mrf.mxu3 }
0x1093   :  { %v1191_v23 = vadd.f32 %v1190_v20, %v1149_v21 }
0x1095   :  { %v1199_v29 = vmax.f32 %v1191_v23, 0.0 }
0x109a   :  { %v1192_v22 = vpop.f32.mrf.mxu3 }
0x109b   :  { %v1193_v25 = vadd.f32 %v1192_v22, %v1149_v21 }
0x109d   :  { %v1200_v27 = vmax.f32 %v1193_v25, 0.0 }
0x109f   :  { %1211 = vmatpush.msra.mxu0 %v1200_v27 }
0x10a1   :  { %1212 = vmatpush.msra.mxu0 %v1199_v29 }
0x10a3   :  { %1213 = vmatpush.msra.mxu0 %v1198_v31 }
0x10a5   :  { %1214 = vmatpush.msra.mxu0 %v1197_v32 }
0x10a7   :  { %1215 = vmatpush.msra.mxu0 %v1196_v62 }
0x10a9   :  { %1216 = vmatpush.msra.mxu0 %v1195_v33 }
0x10aa   :  { %1687 = vmatmul.msk.f32.vlgmr.msra.gmra.mxu0 %vm310_vm5, %v1943_v2 }
0x10ab   :  { %1263 = vmatpush.bf16.msrb.mxu0 %v1772_v61 }
0x10af   :  { %1264 = vmatpush.bf16.msrb.mxu0 %v1771_v34 }
0x10b2   :  { %1688 = vmatmul.msk.f32.gmra.mxu0 %vm310_vm5, %v1950_v8 }
0x1127   :  { %v1218_v63 = vpop.f32.mrf.mxu0 }
0x112f   :  { %v1221_v35 = vpop.f32.mrf.mxu0 }
0x1130   :  { %v1241_v36 = vpack.c.bf16 %v1221_v35, %v1218_v63 }
0x1132   :  { %1710 = vmatmul.msk.bf16.vlgmr.msrb.gmra.mxu0 %vm33_vm0, %v1241_v36 }
0x11af   :  { %v1266_v37 = vpop.f32.mrf.mxu0 }
0x11b7   :  { %v1268_v2 = vpop.f32.mrf.mxu0 }
0x11b8   :  { %v1816_v38 = vpack.i.bf16 %v1268_v2, %v1266_v37  ;;  %v1279_v42 = vpack.c.bf16 %v1268_v2, %v1266_v37  ;;  %v1370_v2 = vperm.slane %v1701_v49, 2 }
0x11ba   :  { %1817 = vrot.lane.b32.xlu2 %v1816_v38, %s1831_s14 }
0x1214   :  { %v1818_v8 = vpop.permute.xlu2 %1817 }
0x1215   :  { %v1820_v39 = vunpack.i.h.bf16 %v1818_v8  ;;  %v1819_v40 = vunpack.i.l.bf16 %v1818_v8 }
0x1217   :  { %v1280_v41 = vpack.c.bf16 %v1820_v39, %v1819_v40 }
0x1219   :  { %1288 = vmatpush.bf16.msra.mxu0 %v1280_v41 }
0x121d   :  { %1289 = vmatpush.bf16.msra.mxu0 %v1279_v42 }
0x1220   :  { %1711 = vmatmul.msk.bf16.vlgmr.msra.gmra.mxu0 %vm33_vm0, %v1825_v43 }
0x1230   :  { %1712 = vmatmul.msk.bf16.gmra.mxu0 %vm33_vm0, %v1826_v44  ;;  %v1828_v44 = vld [vmem:[%s2174_s2] sm:$0xff] }
0x1240   :  { %1713 = vmatmul.msk.bf16.gmra.mxu0 %vm33_vm0, %v1827_v45  ;;  %v1829_v45 = vld [vmem:[%s2174_s2 + $0x8] sm:$0xff] }
0x129d   :  { %v1291_v50 = vpop.f32.mrf.mxu0 }
0x129e   :  { %v1292_v52 = vadd.f32 %v1291_v50, %v1281_v51 }
0x12a0   :  { %v1306_v54 = vmax.f32 %v1292_v52, 0.0 }
0x12a5   :  { %v1293_v46 = vpop.f32.mrf.mxu0 }
0x12a6   :  { %v1294_v53 = vadd.f32 %v1293_v46, %v1281_v51 }
0x12a8   :  { %v1307_v55 = vmax.f32 %v1294_v53, 0.0 }
0x12aa   :  { %v1312_v56 = vpack.c.bf16 %v1307_v55, %v1306_v54 }
0x12ac   :  { %1722 = vmatmul.msk.bf16.vlgmr.msra.gmra.mxu1 %vm33_vm0, %v1312_v56 }
0x12ad   :  { %v1296_v57 = vpop.f32.mrf.mxu0 }
0x12ae   :  { %v1297_v58 = vadd.f32 %v1296_v57, %v1281_v51 }
0x12b0   :  { %v1308_v0 = vmax.f32 %v1297_v58, 0.0 }
0x12b5   :  { %v1298_v59 = vpop.f32.mrf.mxu0 }
0x12b6   :  { %v1299_v60 = vadd.f32 %v1298_v59, %v1281_v51 }
0x12b8   :  { %v1309_v1 = vmax.f32 %v1299_v60, 0.0 }
0x12ba   :  { %v1313_v3 = vpack.c.bf16 %v1309_v1, %v1308_v0 }
0x12bc   :  { %1723 = vmatmul.msk.bf16.gmra.mxu1 %vm33_vm0, %v1313_v3 }
0x12bd   :  { %v1301_v4 = vpop.f32.mrf.mxu0 }
0x12be   :  { %v1302_v5 = vadd.f32 %v1301_v4, %v1281_v51 }
0x12c0   :  { %v1310_v10 = vmax.f32 %v1302_v5, 0.0 }
0x12c5   :  { %v1303_v6 = vpop.f32.mrf.mxu0 }
0x12c6   :  { %v1304_v7 = vadd.f32 %v1303_v6, %v1281_v51 }
0x12c8   :  { %v1311_v11 = vmax.f32 %v1304_v7, 0.0 }
0x12ca   :  { %v1314_v12 = vpack.c.bf16 %v1311_v11, %v1310_v10 }
0x12cc   :  { %1724 = vmatmul.msk.bf16.gmra.mxu1 %vm33_vm0, %v1314_v12 }
0x1329   :  { %v1346_v15 = vpop.f32.mrf.mxu1 }
0x132a   :  { %v1347_v16 = vadd.f32 %v1346_v15, %v1315_v9 }
0x132c   :  { %v1361_v19 = vmax.f32 %v1347_v16, 0.0 }
0x1331   :  { %v1348_v17 = vpop.f32.mrf.mxu1 }
0x1332   :  { %v1349_v18 = vadd.f32 %v1348_v17, %v1315_v9 }
0x1334   :  { %v1362_v20 = vmax.f32 %v1349_v18, 0.0 }
0x1336   :  { %v1367_v21 = vpack.c.bf16 %v1362_v20, %v1361_v19 }
0x1338   :  { %1733 = vmatmul.msk.bf16.vlgmr.msra.gmra.mxu2 %vm33_vm0, %v1367_v21 }
0x1339   :  { %v1351_v22 = vpop.f32.mrf.mxu1 }
0x133a   :  { %v1352_v23 = vadd.f32 %v1351_v22, %v1315_v9 }
0x133c   :  { %v1363_v27 = vmax.f32 %v1352_v23, 0.0 }
0x1341   :  { %v1353_v25 = vpop.f32.mrf.mxu1 }
0x1342   :  { %v1354_v26 = vadd.f32 %v1353_v25, %v1315_v9 }
0x1344   :  { %v1364_v28 = vmax.f32 %v1354_v26, 0.0 }
0x1346   :  { %v1368_v29 = vpack.c.bf16 %v1364_v28, %v1363_v27 }
0x1348   :  { %1734 = vmatmul.msk.bf16.gmra.mxu2 %vm33_vm0, %v1368_v29 }
0x1349   :  { %v1356_v30 = vpop.f32.mrf.mxu1 }
0x134a   :  { %v1357_v31 = vadd.f32 %v1356_v30, %v1315_v9 }
0x134c   :  { %v1365_v62 = vmax.f32 %v1357_v31, 0.0 }
0x1351   :  { %v1358_v24 = vpop.f32.mrf.mxu1 }
0x1352   :  { %v1359_v32 = vadd.f32 %v1358_v24, %v1315_v9 }
0x1354   :  { %v1366_v33 = vmax.f32 %v1359_v32, 0.0 }
0x1356   :  { %v1369_v61 = vpack.c.bf16 %v1366_v33, %v1365_v62 }
0x1358   :  { %1735 = vmatmul.msk.bf16.gmra.mxu2 %vm33_vm0, %v1369_v61 }
0x13bb   :  { %v1401_v34 = vpop.f32.mrf.mxu2 }
0x13bc   :  { %v1402_v43 = vadd.f32 %v1401_v34, %v1370_v2 }
0x13c3   :  { %v1403_v63 = vpop.f32.mrf.mxu2 }
0x13c4   :  { %v1404_v42 = vadd.f32 %v1403_v63, %v1370_v2 }
0x13cb   :  { %v1406_v35 = vpop.f32.mrf.mxu2 }
0x13cc   :  { %v1407_v41 = vadd.f32 %v1406_v35, %v1370_v2 }
0x13d3   :  { %v1408_v36 = vpop.f32.mrf.mxu2 }
0x13d4   :  { %v1409_v40 = vadd.f32 %v1408_v36, %v1370_v2 }
0x13db   :  { %v1411_v37 = vpop.f32.mrf.mxu2 }
0x13dc   :  { %v1412_v39 = vadd.f32 %v1411_v37, %v1370_v2 }
0x13e3   :  { %v1413_v38 = vpop.f32.mrf.mxu2 }
0x13e4   :  { %v1414_v8 = vadd.f32 %v1413_v38, %v1370_v2 }
0x13e6   :  { %1426 = vmatpush.msra.mxu3 %v1414_v8 }
0x13e8   :  { %1427 = vmatpush.msra.mxu3 %v1412_v39 }
0x13ea   :  { %1428 = vmatpush.msra.mxu3 %v1409_v40 }
0x13ec   :  { %1429 = vmatpush.msra.mxu3 %v1407_v41 }
0x13ee   :  { %1430 = vmatpush.msra.mxu3 %v1404_v42 }
0x13f0   :  { %1431 = vmatpush.msra.mxu3 %v1402_v43 }
0x13f1   :  { %1736 = vmatmul.msk.f32.vlgmr.msra.gmra.mxu3 %vm310_vm5, %v1828_v44 }
0x13f9   :  { %1737 = vmatmul.msk.f32.gmra.mxu3 %vm310_vm5, %v1829_v45 }
0x1474   :  { %v1433_v47 = vpop.f32.mrf.mxu3 }
0x1475   :  { %1439 = vst.msk [vmem:[%s2175_s8] sm:$0xff] %vm33_vm0, %v1433_v47 }
0x147c   :  { %v1436_v48 = vpop.f32.mrf.mxu3 }
0x147d   :  { %1440 = vst.msk [vmem:[%s2175_s8 + $0x8] sm:$0xff] %vm33_vm0, %v1436_v48 }

</bundles_post_ra>
